<compile_context>
chip_gen: v7x
topology: tpu7x:2x2x1
jax: 0.10.0
libtpu: 0.0.40
codegen_flags: <defaults>
</compile_context>

<pallas_src>
import functools
import math

import jax
import jax.numpy as jnp
from jax.experimental import pallas as pl
from jax.experimental.pallas import tpu as pltpu


def _layer_norm(x, g, b, eps):
    mu = jnp.mean(x, axis=-1, keepdims=True)
    var = jnp.mean(jnp.square(x - mu), axis=-1, keepdims=True)
    return (x - mu) * jax.lax.rsqrt(var + eps) * g + b


def _encoder_stack_kernel(*refs, TB, S, D, H, Dh, has_pos, pos_2d, has_mask,
                          has_final, eps):
    it = iter(refs)
    x_ref = next(it)
    pos_ref = next(it) if has_pos else None
    mask_ref = next(it) if has_mask else None
    wqk_ref = next(it); bqk_ref = next(it)
    wv_ref = next(it);  bv_ref = next(it)
    wo_ref = next(it);  bo_ref = next(it)
    ln1g_ref = next(it); ln1b_ref = next(it)
    w1_ref = next(it);  b1_ref = next(it)
    w2_ref = next(it);  b2_ref = next(it)
    ln2g_ref = next(it); ln2b_ref = next(it)
    if has_final:
        fng_ref = next(it); fnb_ref = next(it)
    o_ref = next(it)
    act_ref = next(it)            # (TB*S, D) f32 VMEM, carried across layers

    bf16, f32 = jnp.bfloat16, jnp.float32
    M = TB * S
    layer = pl.program_id(1)

    # First layer of each batch tile: load src from HBM into the carried state.
    @pl.when(layer == 0)
    def _():
        act_ref[...] = x_ref[...].reshape(M, D).astype(f32)

    x = act_ref[...]                                              # (M, D) f32

    if has_pos:
        if pos_2d:                                  # shared (S, D) pos-embed
            pos = pos_ref[...].astype(f32)
            qk_in = (x.reshape(TB, S, D) + pos[None]).reshape(M, D)
        else:                                       # per-batch (B, S, D)
            qk_in = x + pos_ref[...].reshape(M, D).astype(f32)
    else:
        qk_in = x

    # ---- self-attention: q = k = src + pos, v = src ------------------------
    # Packed q/k projection; 1/sqrt(Dh) pre-folded into the q weights/bias.
    qk = jnp.dot(qk_in.astype(bf16), wqk_ref[0],
                 preferred_element_type=f32) + bqk_ref[0]          # (M, 2D)
    v = jnp.dot(x.astype(bf16), wv_ref[0],
                preferred_element_type=f32) + bv_ref[0]            # (M, D)

    # Cast once, then slice per head (bf16 halves the live footprint).
    q_bf = qk[:, :D].astype(bf16).reshape(TB, S, D)
    k_bf = qk[:, D:].astype(bf16).reshape(TB, S, D)
    v_bf = v.astype(bf16).reshape(TB, S, D)

    heads = []
    for h in range(H):                               # static unroll (H small)
        sl = slice(h * Dh, (h + 1) * Dh)
        s = jnp.einsum('bqd,bkd->bqk', q_bf[:, :, sl], k_bf[:, :, sl],
                       preferred_element_type=f32)                 # (TB, S, S)
        if has_mask:
            s = s + mask_ref[...][None]              # additive float mask
        s = s - jnp.max(s, axis=-1, keepdims=True)
        p = jnp.exp(s)
        p = p / jnp.sum(p, axis=-1, keepdims=True)   # exact softmax
        oh = jnp.einsum('bqk,bkd->bqd', p.astype(bf16), v_bf[:, :, sl],
                        preferred_element_type=f32)                # (TB, S, Dh)
        heads.append(oh.astype(bf16))

    # Un-folded out-projection: one K=D matmul on the concatenated heads.
    attn_cat = jnp.concatenate(heads, axis=-1).reshape(M, D)       # (M, D) bf16
    attn = jnp.dot(attn_cat, wo_ref[0],
                   preferred_element_type=f32) + bo_ref[0]         # (M, D) f32

    # residual + LayerNorm1 (post-norm)
    h1 = _layer_norm(x + attn, ln1g_ref[0], ln1b_ref[0], eps)

    # ---- FFN: linear1 -> ReLU -> linear2 -----------------------------------
    f = jnp.dot(h1.astype(bf16), w1_ref[0],
                preferred_element_type=f32) + b1_ref[0]            # (M, Dff)
    f = jnp.maximum(f, 0.0)
    f = jnp.dot(f.astype(bf16), w2_ref[0],
                preferred_element_type=f32) + b2_ref[0]            # (M, D)

    out = _layer_norm(h1 + f, ln2g_ref[0], ln2b_ref[0], eps)
    act_ref[...] = out                               # carry to next layer

    @pl.when(layer == pl.num_programs(1) - 1)
    def _():
        final = out
        if has_final:                # TransformerEncoder.norm fused here
            final = _layer_norm(final, fng_ref[...], fnb_ref[...], eps)
        o_ref[...] = final.reshape(TB, S, D).astype(o_ref.dtype)


def prepare_params(layer_params, final_norm=None):
    """One-time parameter prep (hoisted out of the forward):
    PyTorch-layout params -> stacked (L, ...) pre-transposed bf16 matmul
    weights / f32 bias + LN params, with 1/sqrt(Dh) folded into q."""
    f32, bf16 = jnp.float32, jnp.bfloat16
    D = layer_params[0]["in_proj_w"].shape[1]
    H = int(layer_params[0]["nhead"])
    Dh = D // H
    scale = 1.0 / math.sqrt(Dh)
    keys = ("wqk", "bqk", "wv", "bv", "wo", "bo", "ln1g", "ln1b",
            "w1", "b1", "w2", "b2", "ln2g", "ln2b")
    cols = {k: [] for k in keys}
    for lp in layer_params:
        assert int(lp["nhead"]) == H
        w_in, b_in = lp["in_proj_w"], lp["in_proj_b"]       # (3D, D), (3D,)
        wq = jnp.transpose(w_in[:D]) * scale                # scale folded in
        wk = jnp.transpose(w_in[D:2 * D])
        cols["wqk"].append(jnp.concatenate([wq, wk], axis=1).astype(bf16))
        cols["bqk"].append(jnp.concatenate([b_in[:D] * scale, b_in[D:2 * D]])
                           .reshape(1, 2 * D).astype(f32))
        cols["wv"].append(jnp.transpose(w_in[2 * D:]).astype(bf16))
        cols["bv"].append(b_in[2 * D:].reshape(1, D).astype(f32))
        cols["wo"].append(jnp.transpose(lp["out_proj_w"]).astype(bf16))
        cols["bo"].append(lp["out_proj_b"].reshape(1, D).astype(f32))
        cols["ln1g"].append(lp["ln1_g"].reshape(1, D).astype(f32))
        cols["ln1b"].append(lp["ln1_b"].reshape(1, D).astype(f32))
        Dff = lp["lin1_w"].shape[0]
        cols["w1"].append(jnp.transpose(lp["lin1_w"]).astype(bf16))
        cols["b1"].append(lp["lin1_b"].reshape(1, Dff).astype(f32))
        cols["w2"].append(jnp.transpose(lp["lin2_w"]).astype(bf16))
        cols["b2"].append(lp["lin2_b"].reshape(1, D).astype(f32))
        cols["ln2g"].append(lp["ln2_g"].reshape(1, D).astype(f32))
        cols["ln2b"].append(lp["ln2_b"].reshape(1, D).astype(f32))
    params = {k: jnp.stack(v, axis=0) for k, v in cols.items()}
    params["nhead"] = H
    if final_norm is not None:
        g, b = final_norm
        params["fng"] = jnp.asarray(g).reshape(1, D).astype(f32)
        params["fnb"] = jnp.asarray(b).reshape(1, D).astype(f32)
    return params


def _pick_batch_tile(B, S, target_rows=256):
    """Smallest divisor of B whose tile gives >= target_rows matmul rows."""
    for cand in range(1, B + 1):
        if B % cand == 0 and cand * S >= target_rows:
            return cand
    return B


def transformer_encoder(src, params, *, src_mask=None, pos_embed=None,
                        eps=1e-5, batch_tile=None):
    """TransformerEncoder.forward: all layers + optional final norm in ONE
    fused pallas_call. src: (B, S, D); params from prepare_params()."""
    B, S, D = src.shape
    H = int(params["nhead"])
    Dh = D // H
    assert D % H == 0
    L = params["wqk"].shape[0]
    Dff = params["w1"].shape[2]

    TB = batch_tile if batch_tile is not None else _pick_batch_tile(B, S)
    assert B % TB == 0

    has_pos = pos_embed is not None
    has_mask = src_mask is not None
    has_final = "fng" in params
    pos_2d = bool(has_pos and pos_embed.ndim == 2)

    inputs, in_specs = [], []
    blk_bytes = 0

    def _add(arr, block_shape, index_map):
        nonlocal blk_bytes
        arr = jnp.asarray(arr)
        inputs.append(arr)
        in_specs.append(pl.BlockSpec(block_shape, index_map))
        blk_bytes += 2 * math.prod(block_shape) * arr.dtype.itemsize  # dbl-buf

    _add(src, (TB, S, D), lambda b, l: (b, 0, 0))
    if has_pos:
        if pos_2d:    # shared (S, D) pos-embed across the batch
            _add(pos_embed, (S, D), lambda b, l: (0, 0))
        else:         # per-batch (B, S, D) pos-embed
            _add(pos_embed, (TB, S, D), lambda b, l: (b, 0, 0))
    if has_mask:
        # TODO(synk): only additive float (S, S) attn masks are supported
        # (no bool masks / key_padding_mask).
        _add(jnp.asarray(src_mask, jnp.float32).reshape(S, S),
             (S, S), lambda b, l: (0, 0))

    weight_keys = ("wqk", "bqk", "wv", "bv", "wo", "bo", "ln1g", "ln1b",
                   "w1", "b1", "w2", "b2", "ln2g", "ln2b")
    for k_ in weight_keys:        # layer-indexed weight streaming
        w = params[k_]
        _add(w, (1,) + tuple(w.shape[1:]), lambda b, l: (l, 0, 0))
    if has_final:                 # grid-invariant final-norm params
        _add(params["fng"], (1, D), lambda b, l: (0, 0))
        _add(params["fnb"], (1, D), lambda b, l: (0, 0))

    # Explicit VMEM budget: double-buffered blocks + output + activation
    # scratch + rough in-flight intermediates.  Capped at 48 MiB (safe on
    # v7x's 64 MiB physical VMEM; raise toward ~100 MiB on v5e/v6e if needed).
    M = TB * S
    inter = (M * (2 * D + D + Dff) * 4      # qk, v, ffn hidden (f32)
             + M * 3 * D * 2                # bf16 q/k/v copies
             + 3 * TB * S * S * 4)          # per-head score buffers (margin)
    est = (blk_bytes + 2 * M * D * src.dtype.itemsize + M * D * 4
           + inter + (2 << 20))
    vmem_limit = int(min(max(est, 16 << 20), 48 << 20))

    kernel = functools.partial(
        _encoder_stack_kernel, TB=TB, S=S, D=D, H=H, Dh=Dh,
        has_pos=has_pos, pos_2d=pos_2d, has_mask=has_mask,
        has_final=has_final, eps=eps)

    return pl.pallas_call(
        kernel,
        out_shape=jax.ShapeDtypeStruct((B, S, D), src.dtype),
        grid_spec=pltpu.PrefetchScalarGridSpec(
            num_scalar_prefetch=0,
            grid=(B // TB, L),                       # layer axis innermost
            in_specs=in_specs,
            out_specs=pl.BlockSpec((TB, S, D), lambda b, l: (b, 0, 0)),
            scratch_shapes=[pltpu.VMEM((TB * S, D), jnp.float32)],
        ),
        compiler_params=pltpu.CompilerParams(
            dimension_semantics=("parallel", "arbitrary"),
            vmem_limit_bytes=vmem_limit),
    )(*inputs)


def make_params(key, d_model, nhead, dim_feedforward, num_layers):
    """Deterministic synthetic parameters in PyTorch layouts/shapes."""
    layers = []
    k = key
    s = 0.05
    for _ in range(num_layers):
        k, k1, k2, k3, k4 = jax.random.split(k, 5)
        idx = jnp.arange(d_model, dtype=jnp.float32)
        layers.append(dict(
            nhead=nhead,
            in_proj_w=s * jax.random.normal(k1, (3 * d_model, d_model), jnp.float32),
            in_proj_b=0.01 * jnp.arange(3 * d_model, dtype=jnp.float32) / (3 * d_model),
            out_proj_w=s * jax.random.normal(k2, (d_model, d_model), jnp.float32),
            out_proj_b=jnp.zeros((d_model,), jnp.float32),
            ln1_g=1.0 + 0.02 * idx / d_model,
            ln1_b=0.01 * idx / d_model,
            lin1_w=s * jax.random.normal(k3, (dim_feedforward, d_model), jnp.float32),
            lin1_b=0.01 * jnp.ones((dim_feedforward,), jnp.float32),
            lin2_w=s * jax.random.normal(k4, (d_model, dim_feedforward), jnp.float32),
            lin2_b=jnp.zeros((d_model,), jnp.float32),
            ln2_g=1.0 - 0.01 * idx / d_model,
            ln2_b=-0.01 * idx / d_model,
        ))
    idx = jnp.arange(d_model, dtype=jnp.float32)
    final_norm = (1.0 + 0.01 * idx / d_model, 0.001 * idx / d_model)
    return layers, final_norm


if __name__ == "__main__":
    key = jax.random.PRNGKey(0)
    kx, kp, kpos = jax.random.split(key, 3)

    B, S, D, NHEAD, DFF, NLAYERS = 2, 16, 128, 4, 256, 2
    src = jax.random.normal(kx, (B, S, D), jnp.float32)
    pos_embed = 0.1 * jax.random.normal(kpos, (S, D), jnp.float32)

    layer_params, final_norm = make_params(kp, D, NHEAD, DFF, NLAYERS)
    params = prepare_params(layer_params, final_norm=final_norm)   # one-time

    out = transformer_encoder(src, params, src_mask=None, pos_embed=pos_embed)
    jax.block_until_ready(out)
    assert out.shape == (B, S, D)
    assert bool(jnp.all(jnp.isfinite(out)))
    print("KERNEL_OK")
</pallas_src>

<mosaic_0001>
module attributes {stable_mosaic.version = 11 : i64} {
  func.func @_encoder_stack_kernel(%arg0: i32, %arg1: i32, %arg2: memref<2x16x128xf32, #tpu.memory_space<vmem>>, %arg3: memref<16x128xf32, #tpu.memory_space<vmem>>, %arg4: memref<1x128x256xbf16, #tpu.memory_space<vmem>>, %arg5: memref<1x1x256xf32, #tpu.memory_space<vmem>>, %arg6: memref<1x128x128xbf16, #tpu.memory_space<vmem>>, %arg7: memref<1x1x128xf32, #tpu.memory_space<vmem>>, %arg8: memref<1x128x128xbf16, #tpu.memory_space<vmem>>, %arg9: memref<1x1x128xf32, #tpu.memory_space<vmem>>, %arg10: memref<1x1x128xf32, #tpu.memory_space<vmem>>, %arg11: memref<1x1x128xf32, #tpu.memory_space<vmem>>, %arg12: memref<1x128x256xbf16, #tpu.memory_space<vmem>>, %arg13: memref<1x1x256xf32, #tpu.memory_space<vmem>>, %arg14: memref<1x256x128xbf16, #tpu.memory_space<vmem>>, %arg15: memref<1x1x128xf32, #tpu.memory_space<vmem>>, %arg16: memref<1x1x128xf32, #tpu.memory_space<vmem>>, %arg17: memref<1x1x128xf32, #tpu.memory_space<vmem>>, %arg18: memref<1x128xf32, #tpu.memory_space<vmem>>, %arg19: memref<1x128xf32, #tpu.memory_space<vmem>>, %arg20: memref<2x16x128xf32, #tpu.memory_space<vmem>>, %arg21: memref<32x128xf32, #tpu.memory_space<vmem>>) attributes {dimension_semantics = [#tpu.dimension_semantics<parallel>, #tpu.dimension_semantics<arbitrary>], iteration_bounds = array<i64: 1, 2>, scalar_prefetch = 0 : i64, scratch_operands = 1 : i64, tpu.core_type = #tpu.core_type<tc>, window_params = [{transform_indices = @transform_0, window_bounds = array<i64: 2, 16, 128>}, {pipeline_mode = #tpu.pipeline_mode<synchronous>, transform_indices = @transform_1, window_bounds = array<i64: 16, 128>}, {transform_indices = @transform_2, window_bounds = array<i64: 1, 128, 256>}, {transform_indices = @transform_3, window_bounds = array<i64: 1, 1, 256>}, {transform_indices = @transform_4, window_bounds = array<i64: 1, 128, 128>}, {transform_indices = @transform_5, window_bounds = array<i64: 1, 1, 128>}, {transform_indices = @transform_6, window_bounds = array<i64: 1, 128, 128>}, {transform_indices = @transform_7, window_bounds = array<i64: 1, 1, 128>}, {transform_indices = @transform_8, window_bounds = array<i64: 1, 1, 128>}, {transform_indices = @transform_9, window_bounds = array<i64: 1, 1, 128>}, {transform_indices = @transform_10, window_bounds = array<i64: 1, 128, 256>}, {transform_indices = @transform_11, window_bounds = array<i64: 1, 1, 256>}, {transform_indices = @transform_12, window_bounds = array<i64: 1, 256, 128>}, {transform_indices = @transform_13, window_bounds = array<i64: 1, 1, 128>}, {transform_indices = @transform_14, window_bounds = array<i64: 1, 1, 128>}, {transform_indices = @transform_15, window_bounds = array<i64: 1, 1, 128>}, {pipeline_mode = #tpu.pipeline_mode<synchronous>, transform_indices = @transform_16, window_bounds = array<i64: 1, 128>}, {pipeline_mode = #tpu.pipeline_mode<synchronous>, transform_indices = @transform_17, window_bounds = array<i64: 1, 128>}, {transform_indices = @transform_18, window_bounds = array<i64: 2, 16, 128>}]} {
    %c0_i32 = arith.constant 0 : i32
    %0 = arith.cmpi eq, %arg1, %c0_i32 : i32
    %1 = arith.extui %0 : i1 to i32
    %c0_i32_0 = arith.constant 0 : i32
    %2 = arith.cmpi ne, %1, %c0_i32_0 : i32
    scf.if %2 {
      %c0_80 = arith.constant 0 : index
      %c0_81 = arith.constant 0 : index
      %c0_82 = arith.constant 0 : index
      %183 = vector.load %arg2[%c0_80, %c0_81, %c0_82] : memref<2x16x128xf32, #tpu.memory_space<vmem>>, vector<2x16x128xf32>
      %184 = vector.shape_cast %183 : vector<2x16x128xf32> to vector<32x128xf32>
      %c0_83 = arith.constant 0 : index
      %c0_84 = arith.constant 0 : index
      %185 = vector.load %arg21[%c0_83, %c0_84] : memref<32x128xf32, #tpu.memory_space<vmem>>, vector<32x128xf32>
      tpu.vector_store %arg21[%c0_83, %c0_84], %184 {strides = array<i32>} : memref<32x128xf32, #tpu.memory_space<vmem>>, vector<32x128xf32>,
    } else {
    }
    %c0 = arith.constant 0 : index
    %c0_1 = arith.constant 0 : index
    %3 = vector.load %arg21[%c0, %c0_1] : memref<32x128xf32, #tpu.memory_space<vmem>>, vector<32x128xf32>
    %c0_2 = arith.constant 0 : index
    %c0_3 = arith.constant 0 : index
    %4 = vector.load %arg3[%c0_2, %c0_3] : memref<16x128xf32, #tpu.memory_space<vmem>>, vector<16x128xf32>
    %5 = vector.shape_cast %3 : vector<32x128xf32> to vector<2x16x128xf32>
    %6 = vector.shape_cast %4 : vector<16x128xf32> to vector<1x16x128xf32>
    %7 = vector.broadcast %6 : vector<1x16x128xf32> to vector<2x16x128xf32>
    %8 = arith.addf %5, %7 : vector<2x16x128xf32>
    %9 = vector.shape_cast %8 : vector<2x16x128xf32> to vector<32x128xf32>
    %10 = arith.truncf %9 : vector<32x128xf32> to vector<32x128xbf16>
    %c0_4 = arith.constant 0 : index
    %c0_5 = arith.constant 0 : index
    %c0_6 = arith.constant 0 : index
    %11 = vector.load %arg4[%c0_4, %c0_5, %c0_6] : memref<1x128x256xbf16, #tpu.memory_space<vmem>>, vector<1x128x256xbf16>
    %12 = vector.shape_cast %11 : vector<1x128x256xbf16> to vector<128x256xbf16>
    %cst = arith.constant dense<0.000000e+00> : vector<32x256xf32>
    %13 = tpu.matmul %10, %12, %cst {dimension_numbers = #tpu.dot_dimension_numbers<[1], [0], [0], [1], [0, 0, 1, 1], [], []>} : vector<32x128xbf16>, vector<128x256xbf16>, vector<32x256xf32> -> vector<32x256xf32>
    %c0_7 = arith.constant 0 : index
    %c0_8 = arith.constant 0 : index
    %c0_9 = arith.constant 0 : index
    %14 = vector.load %arg5[%c0_7, %c0_8, %c0_9] : memref<1x1x256xf32, #tpu.memory_space<vmem>>, vector<1x1x256xf32>
    %15 = vector.shape_cast %14 : vector<1x1x256xf32> to vector<1x256xf32>
    %16 = vector.broadcast %15 : vector<1x256xf32> to vector<32x256xf32>
    %17 = arith.addf %13, %16 : vector<32x256xf32>
    %18 = arith.truncf %3 : vector<32x128xf32> to vector<32x128xbf16>
    %c0_10 = arith.constant 0 : index
    %c0_11 = arith.constant 0 : index
    %c0_12 = arith.constant 0 : index
    %19 = vector.load %arg6[%c0_10, %c0_11, %c0_12] : memref<1x128x128xbf16, #tpu.memory_space<vmem>>, vector<1x128x128xbf16>
    %20 = vector.shape_cast %19 : vector<1x128x128xbf16> to vector<128x128xbf16>
    %cst_13 = arith.constant dense<0.000000e+00> : vector<32x128xf32>
    %21 = tpu.matmul %18, %20, %cst_13 {dimension_numbers = #tpu.dot_dimension_numbers<[1], [0], [0], [1], [0, 0, 1, 1], [], []>} : vector<32x128xbf16>, vector<128x128xbf16>, vector<32x128xf32> -> vector<32x128xf32>
    %c0_14 = arith.constant 0 : index
    %c0_15 = arith.constant 0 : index
    %c0_16 = arith.constant 0 : index
    %22 = vector.load %arg7[%c0_14, %c0_15, %c0_16] : memref<1x1x128xf32, #tpu.memory_space<vmem>>, vector<1x1x128xf32>
    %23 = vector.shape_cast %22 : vector<1x1x128xf32> to vector<1x128xf32>
    %24 = vector.broadcast %23 : vector<1x128xf32> to vector<32x128xf32>
    %25 = arith.addf %21, %24 : vector<32x128xf32>
    %26 = vector.extract_strided_slice %17 {offsets = [0, 0], sizes = [32, 128], strides = [1, 1]} : vector<32x256xf32> to vector<32x128xf32>
    %27 = arith.truncf %26 : vector<32x128xf32> to vector<32x128xbf16>
    %28 = vector.shape_cast %27 : vector<32x128xbf16> to vector<2x16x128xbf16>
    %29 = vector.extract_strided_slice %17 {offsets = [0, 128], sizes = [32, 128], strides = [1, 1]} : vector<32x256xf32> to vector<32x128xf32>
    %30 = arith.truncf %29 : vector<32x128xf32> to vector<32x128xbf16>
    %31 = vector.shape_cast %30 : vector<32x128xbf16> to vector<2x16x128xbf16>
    %32 = arith.truncf %25 : vector<32x128xf32> to vector<32x128xbf16>
    %33 = vector.shape_cast %32 : vector<32x128xbf16> to vector<2x16x128xbf16>
    %34 = vector.extract_strided_slice %28 {offsets = [0, 0, 0], sizes = [2, 16, 32], strides = [1, 1, 1]} : vector<2x16x128xbf16> to vector<2x16x32xbf16>
    %35 = vector.extract_strided_slice %31 {offsets = [0, 0, 0], sizes = [2, 16, 32], strides = [1, 1, 1]} : vector<2x16x128xbf16> to vector<2x16x32xbf16>
    "tpu.trace_start"() <{level = 10 : i32, message = "bqd,bkd->bqk"}> : () -> ()
    %cst_17 = arith.constant dense<0.000000e+00> : vector<2x16x16xf32>
    %36 = tpu.matmul %34, %35, %cst_17 {dimension_numbers = #tpu.dot_dimension_numbers<[2], [2], [1], [1], [0, 0, 0, 1, 1, 1], [0], [0]>} : vector<2x16x32xbf16>, vector<2x16x32xbf16>, vector<2x16x16xf32> -> vector<2x16x16xf32>
    "tpu.trace_stop"() : () -> ()
    %cst_18 = arith.constant dense<0xFF800000> : vector<2x16xf32>
    %37 = vector.multi_reduction <maximumf>, %36, %cst_18 [2] : vector<2x16x16xf32> to vector<2x16xf32>
    %38 = vector.shape_cast %37 : vector<2x16xf32> to vector<2x16x1xf32>
    %39 = vector.broadcast %38 : vector<2x16x1xf32> to vector<2x16x16xf32>
    %40 = arith.subf %36, %39 : vector<2x16x16xf32>
    %41 = math.exp %40 : vector<2x16x16xf32>
    %cst_19 = arith.constant dense<0.000000e+00> : vector<2x16xf32>
    %42 = vector.multi_reduction <add>, %41, %cst_19 [2] : vector<2x16x16xf32> to vector<2x16xf32>
    %43 = vector.shape_cast %42 : vector<2x16xf32> to vector<2x16x1xf32>
    %44 = vector.broadcast %43 : vector<2x16x1xf32> to vector<2x16x16xf32>
    %45 = arith.divf %41, %44 : vector<2x16x16xf32>
    %46 = arith.truncf %45 : vector<2x16x16xf32> to vector<2x16x16xbf16>
    %47 = vector.extract_strided_slice %33 {offsets = [0, 0, 0], sizes = [2, 16, 32], strides = [1, 1, 1]} : vector<2x16x128xbf16> to vector<2x16x32xbf16>
    "tpu.trace_start"() <{level = 10 : i32, message = "bqk,bkd->bqd"}> : () -> ()
    %cst_20 = arith.constant dense<0.000000e+00> : vector<2x16x32xf32>
    %48 = tpu.matmul %46, %47, %cst_20 {dimension_numbers = #tpu.dot_dimension_numbers<[2], [1], [1], [2], [0, 0, 0, 1, 1, 2], [0], [0]>} : vector<2x16x16xbf16>, vector<2x16x32xbf16>, vector<2x16x32xf32> -> vector<2x16x32xf32>
    "tpu.trace_stop"() : () -> ()
    %49 = arith.truncf %48 : vector<2x16x32xf32> to vector<2x16x32xbf16>
    %50 = vector.extract_strided_slice %28 {offsets = [0, 0, 32], sizes = [2, 16, 32], strides = [1, 1, 1]} : vector<2x16x128xbf16> to vector<2x16x32xbf16>
    %51 = vector.extract_strided_slice %31 {offsets = [0, 0, 32], sizes = [2, 16, 32], strides = [1, 1, 1]} : vector<2x16x128xbf16> to vector<2x16x32xbf16>
    "tpu.trace_start"() <{level = 10 : i32, message = "bqd,bkd->bqk"}> : () -> ()
    %cst_21 = arith.constant dense<0.000000e+00> : vector<2x16x16xf32>
    %52 = tpu.matmul %50, %51, %cst_21 {dimension_numbers = #tpu.dot_dimension_numbers<[2], [2], [1], [1], [0, 0, 0, 1, 1, 1], [0], [0]>} : vector<2x16x32xbf16>, vector<2x16x32xbf16>, vector<2x16x16xf32> -> vector<2x16x16xf32>
    "tpu.trace_stop"() : () -> ()
    %cst_22 = arith.constant dense<0xFF800000> : vector<2x16xf32>
    %53 = vector.multi_reduction <maximumf>, %52, %cst_22 [2] : vector<2x16x16xf32> to vector<2x16xf32>
    %54 = vector.shape_cast %53 : vector<2x16xf32> to vector<2x16x1xf32>
    %55 = vector.broadcast %54 : vector<2x16x1xf32> to vector<2x16x16xf32>
    %56 = arith.subf %52, %55 : vector<2x16x16xf32>
    %57 = math.exp %56 : vector<2x16x16xf32>
    %cst_23 = arith.constant dense<0.000000e+00> : vector<2x16xf32>
    %58 = vector.multi_reduction <add>, %57, %cst_23 [2] : vector<2x16x16xf32> to vector<2x16xf32>
    %59 = vector.shape_cast %58 : vector<2x16xf32> to vector<2x16x1xf32>
    %60 = vector.broadcast %59 : vector<2x16x1xf32> to vector<2x16x16xf32>
    %61 = arith.divf %57, %60 : vector<2x16x16xf32>
    %62 = arith.truncf %61 : vector<2x16x16xf32> to vector<2x16x16xbf16>
    %63 = vector.extract_strided_slice %33 {offsets = [0, 0, 32], sizes = [2, 16, 32], strides = [1, 1, 1]} : vector<2x16x128xbf16> to vector<2x16x32xbf16>
    "tpu.trace_start"() <{level = 10 : i32, message = "bqk,bkd->bqd"}> : () -> ()
    %cst_24 = arith.constant dense<0.000000e+00> : vector<2x16x32xf32>
    %64 = tpu.matmul %62, %63, %cst_24 {dimension_numbers = #tpu.dot_dimension_numbers<[2], [1], [1], [2], [0, 0, 0, 1, 1, 2], [0], [0]>} : vector<2x16x16xbf16>, vector<2x16x32xbf16>, vector<2x16x32xf32> -> vector<2x16x32xf32>
    "tpu.trace_stop"() : () -> ()
    %65 = arith.truncf %64 : vector<2x16x32xf32> to vector<2x16x32xbf16>
    %66 = vector.extract_strided_slice %28 {offsets = [0, 0, 64], sizes = [2, 16, 32], strides = [1, 1, 1]} : vector<2x16x128xbf16> to vector<2x16x32xbf16>
    %67 = vector.extract_strided_slice %31 {offsets = [0, 0, 64], sizes = [2, 16, 32], strides = [1, 1, 1]} : vector<2x16x128xbf16> to vector<2x16x32xbf16>
    "tpu.trace_start"() <{level = 10 : i32, message = "bqd,bkd->bqk"}> : () -> ()
    %cst_25 = arith.constant dense<0.000000e+00> : vector<2x16x16xf32>
    %68 = tpu.matmul %66, %67, %cst_25 {dimension_numbers = #tpu.dot_dimension_numbers<[2], [2], [1], [1], [0, 0, 0, 1, 1, 1], [0], [0]>} : vector<2x16x32xbf16>, vector<2x16x32xbf16>, vector<2x16x16xf32> -> vector<2x16x16xf32>
    "tpu.trace_stop"() : () -> ()
    %cst_26 = arith.constant dense<0xFF800000> : vector<2x16xf32>
    %69 = vector.multi_reduction <maximumf>, %68, %cst_26 [2] : vector<2x16x16xf32> to vector<2x16xf32>
    %70 = vector.shape_cast %69 : vector<2x16xf32> to vector<2x16x1xf32>
    %71 = vector.broadcast %70 : vector<2x16x1xf32> to vector<2x16x16xf32>
    %72 = arith.subf %68, %71 : vector<2x16x16xf32>
    %73 = math.exp %72 : vector<2x16x16xf32>
    %cst_27 = arith.constant dense<0.000000e+00> : vector<2x16xf32>
    %74 = vector.multi_reduction <add>, %73, %cst_27 [2] : vector<2x16x16xf32> to vector<2x16xf32>
    %75 = vector.shape_cast %74 : vector<2x16xf32> to vector<2x16x1xf32>
    %76 = vector.broadcast %75 : vector<2x16x1xf32> to vector<2x16x16xf32>
    %77 = arith.divf %73, %76 : vector<2x16x16xf32>
    %78 = arith.truncf %77 : vector<2x16x16xf32> to vector<2x16x16xbf16>
    %79 = vector.extract_strided_slice %33 {offsets = [0, 0, 64], sizes = [2, 16, 32], strides = [1, 1, 1]} : vector<2x16x128xbf16> to vector<2x16x32xbf16>
    "tpu.trace_start"() <{level = 10 : i32, message = "bqk,bkd->bqd"}> : () -> ()
    %cst_28 = arith.constant dense<0.000000e+00> : vector<2x16x32xf32>
    %80 = tpu.matmul %78, %79, %cst_28 {dimension_numbers = #tpu.dot_dimension_numbers<[2], [1], [1], [2], [0, 0, 0, 1, 1, 2], [0], [0]>} : vector<2x16x16xbf16>, vector<2x16x32xbf16>, vector<2x16x32xf32> -> vector<2x16x32xf32>
    "tpu.trace_stop"() : () -> ()
    %81 = arith.truncf %80 : vector<2x16x32xf32> to vector<2x16x32xbf16>
    %82 = vector.extract_strided_slice %28 {offsets = [0, 0, 96], sizes = [2, 16, 32], strides = [1, 1, 1]} : vector<2x16x128xbf16> to vector<2x16x32xbf16>
    %83 = vector.extract_strided_slice %31 {offsets = [0, 0, 96], sizes = [2, 16, 32], strides = [1, 1, 1]} : vector<2x16x128xbf16> to vector<2x16x32xbf16>
    "tpu.trace_start"() <{level = 10 : i32, message = "bqd,bkd->bqk"}> : () -> ()
    %cst_29 = arith.constant dense<0.000000e+00> : vector<2x16x16xf32>
    %84 = tpu.matmul %82, %83, %cst_29 {dimension_numbers = #tpu.dot_dimension_numbers<[2], [2], [1], [1], [0, 0, 0, 1, 1, 1], [0], [0]>} : vector<2x16x32xbf16>, vector<2x16x32xbf16>, vector<2x16x16xf32> -> vector<2x16x16xf32>
    "tpu.trace_stop"() : () -> ()
    %cst_30 = arith.constant dense<0xFF800000> : vector<2x16xf32>
    %85 = vector.multi_reduction <maximumf>, %84, %cst_30 [2] : vector<2x16x16xf32> to vector<2x16xf32>
    %86 = vector.shape_cast %85 : vector<2x16xf32> to vector<2x16x1xf32>
    %87 = vector.broadcast %86 : vector<2x16x1xf32> to vector<2x16x16xf32>
    %88 = arith.subf %84, %87 : vector<2x16x16xf32>
    %89 = math.exp %88 : vector<2x16x16xf32>
    %cst_31 = arith.constant dense<0.000000e+00> : vector<2x16xf32>
    %90 = vector.multi_reduction <add>, %89, %cst_31 [2] : vector<2x16x16xf32> to vector<2x16xf32>
    %91 = vector.shape_cast %90 : vector<2x16xf32> to vector<2x16x1xf32>
    %92 = vector.broadcast %91 : vector<2x16x1xf32> to vector<2x16x16xf32>
    %93 = arith.divf %89, %92 : vector<2x16x16xf32>
    %94 = arith.truncf %93 : vector<2x16x16xf32> to vector<2x16x16xbf16>
    %95 = vector.extract_strided_slice %33 {offsets = [0, 0, 96], sizes = [2, 16, 32], strides = [1, 1, 1]} : vector<2x16x128xbf16> to vector<2x16x32xbf16>
    "tpu.trace_start"() <{level = 10 : i32, message = "bqk,bkd->bqd"}> : () -> ()
    %cst_32 = arith.constant dense<0.000000e+00> : vector<2x16x32xf32>
    %96 = tpu.matmul %94, %95, %cst_32 {dimension_numbers = #tpu.dot_dimension_numbers<[2], [1], [1], [2], [0, 0, 0, 1, 1, 2], [0], [0]>} : vector<2x16x16xbf16>, vector<2x16x32xbf16>, vector<2x16x32xf32> -> vector<2x16x32xf32>
    "tpu.trace_stop"() : () -> ()
    %97 = arith.truncf %96 : vector<2x16x32xf32> to vector<2x16x32xbf16>
    %98 = tpu.concatenate %49, %65, %81, %97 in 2 : vector<2x16x32xbf16>, vector<2x16x32xbf16>, vector<2x16x32xbf16>, vector<2x16x32xbf16> -> vector<2x16x128xbf16>
    %99 = vector.shape_cast %98 : vector<2x16x128xbf16> to vector<32x128xbf16>
    %c0_33 = arith.constant 0 : index
    %c0_34 = arith.constant 0 : index
    %c0_35 = arith.constant 0 : index
    %100 = vector.load %arg8[%c0_33, %c0_34, %c0_35] : memref<1x128x128xbf16, #tpu.memory_space<vmem>>, vector<1x128x128xbf16>
    %101 = vector.shape_cast %100 : vector<1x128x128xbf16> to vector<128x128xbf16>
    %cst_36 = arith.constant dense<0.000000e+00> : vector<32x128xf32>
    %102 = tpu.matmul %99, %101, %cst_36 {dimension_numbers = #tpu.dot_dimension_numbers<[1], [0], [0], [1], [0, 0, 1, 1], [], []>} : vector<32x128xbf16>, vector<128x128xbf16>, vector<32x128xf32> -> vector<32x128xf32>
    %c0_37 = arith.constant 0 : index
    %c0_38 = arith.constant 0 : index
    %c0_39 = arith.constant 0 : index
    %103 = vector.load %arg9[%c0_37, %c0_38, %c0_39] : memref<1x1x128xf32, #tpu.memory_space<vmem>>, vector<1x1x128xf32>
    %104 = vector.shape_cast %103 : vector<1x1x128xf32> to vector<1x128xf32>
    %105 = vector.broadcast %104 : vector<1x128xf32> to vector<32x128xf32>
    %106 = arith.addf %102, %105 : vector<32x128xf32>
    %107 = arith.addf %3, %106 : vector<32x128xf32>
    %c0_40 = arith.constant 0 : index
    %c0_41 = arith.constant 0 : index
    %c0_42 = arith.constant 0 : index
    %108 = vector.load %arg10[%c0_40, %c0_41, %c0_42] : memref<1x1x128xf32, #tpu.memory_space<vmem>>, vector<1x1x128xf32>
    %109 = vector.shape_cast %108 : vector<1x1x128xf32> to vector<1x128xf32>
    %c0_43 = arith.constant 0 : index
    %c0_44 = arith.constant 0 : index
    %c0_45 = arith.constant 0 : index
    %110 = vector.load %arg11[%c0_43, %c0_44, %c0_45] : memref<1x1x128xf32, #tpu.memory_space<vmem>>, vector<1x1x128xf32>
    %111 = vector.shape_cast %110 : vector<1x1x128xf32> to vector<1x128xf32>
    %cst_46 = arith.constant dense<0.000000e+00> : vector<32xf32>
    %112 = vector.multi_reduction <add>, %107, %cst_46 [1] : vector<32x128xf32> to vector<32xf32>
    %113 = vector.shape_cast %112 : vector<32xf32> to vector<32x1xf32>
    %cst_47 = arith.constant 1.280000e+02 : f32
    %114 = vector.broadcast %cst_47 : f32 to vector<32x1xf32>
    %115 = arith.divf %113, %114 : vector<32x1xf32>
    %116 = vector.broadcast %115 : vector<32x1xf32> to vector<32x128xf32>
    %117 = arith.subf %107, %116 : vector<32x128xf32>
    %118 = arith.mulf %117, %117 : vector<32x128xf32>
    %cst_48 = arith.constant dense<0.000000e+00> : vector<32xf32>
    %119 = vector.multi_reduction <add>, %118, %cst_48 [1] : vector<32x128xf32> to vector<32xf32>
    %120 = vector.shape_cast %119 : vector<32xf32> to vector<32x1xf32>
    %cst_49 = arith.constant 1.280000e+02 : f32
    %121 = vector.broadcast %cst_49 : f32 to vector<32x1xf32>
    %122 = arith.divf %120, %121 : vector<32x1xf32>
    %123 = vector.broadcast %115 : vector<32x1xf32> to vector<32x128xf32>
    %124 = arith.subf %107, %123 : vector<32x128xf32>
    %cst_50 = arith.constant 9.99999974E-6 : f32
    %125 = vector.broadcast %cst_50 : f32 to vector<32x1xf32>
    %126 = arith.addf %122, %125 : vector<32x1xf32>
    %127 = math.rsqrt %126 : vector<32x1xf32>
    %128 = vector.broadcast %127 : vector<32x1xf32> to vector<32x128xf32>
    %129 = arith.mulf %124, %128 : vector<32x128xf32>
    %130 = vector.broadcast %109 : vector<1x128xf32> to vector<32x128xf32>
    %131 = arith.mulf %129, %130 : vector<32x128xf32>
    %132 = vector.broadcast %111 : vector<1x128xf32> to vector<32x128xf32>
    %133 = arith.addf %131, %132 : vector<32x128xf32>
    %134 = arith.truncf %133 : vector<32x128xf32> to vector<32x128xbf16>
    %c0_51 = arith.constant 0 : index
    %c0_52 = arith.constant 0 : index
    %c0_53 = arith.constant 0 : index
    %135 = vector.load %arg12[%c0_51, %c0_52, %c0_53] : memref<1x128x256xbf16, #tpu.memory_space<vmem>>, vector<1x128x256xbf16>
    %136 = vector.shape_cast %135 : vector<1x128x256xbf16> to vector<128x256xbf16>
    %cst_54 = arith.constant dense<0.000000e+00> : vector<32x256xf32>
    %137 = tpu.matmul %134, %136, %cst_54 {dimension_numbers = #tpu.dot_dimension_numbers<[1], [0], [0], [1], [0, 0, 1, 1], [], []>} : vector<32x128xbf16>, vector<128x256xbf16>, vector<32x256xf32> -> vector<32x256xf32>
    %c0_55 = arith.constant 0 : index
    %c0_56 = arith.constant 0 : index
    %c0_57 = arith.constant 0 : index
    %138 = vector.load %arg13[%c0_55, %c0_56, %c0_57] : memref<1x1x256xf32, #tpu.memory_space<vmem>>, vector<1x1x256xf32>
    %139 = vector.shape_cast %138 : vector<1x1x256xf32> to vector<1x256xf32>
    %140 = vector.broadcast %139 : vector<1x256xf32> to vector<32x256xf32>
    %141 = arith.addf %137, %140 : vector<32x256xf32>
    %cst_58 = arith.constant 0.000000e+00 : f32
    %142 = vector.broadcast %cst_58 : f32 to vector<32x256xf32>
    %143 = arith.maximumf %141, %142 : vector<32x256xf32>
    %144 = arith.truncf %143 : vector<32x256xf32> to vector<32x256xbf16>
    %c0_59 = arith.constant 0 : index
    %c0_60 = arith.constant 0 : index
    %c0_61 = arith.constant 0 : index
    %145 = vector.load %arg14[%c0_59, %c0_60, %c0_61] : memref<1x256x128xbf16, #tpu.memory_space<vmem>>, vector<1x256x128xbf16>
    %146 = vector.shape_cast %145 : vector<1x256x128xbf16> to vector<256x128xbf16>
    %cst_62 = arith.constant dense<0.000000e+00> : vector<32x128xf32>
    %147 = tpu.matmul %144, %146, %cst_62 {dimension_numbers = #tpu.dot_dimension_numbers<[1], [0], [0], [1], [0, 0, 1, 1], [], []>} : vector<32x256xbf16>, vector<256x128xbf16>, vector<32x128xf32> -> vector<32x128xf32>
    %c0_63 = arith.constant 0 : index
    %c0_64 = arith.constant 0 : index
    %c0_65 = arith.constant 0 : index
    %148 = vector.load %arg15[%c0_63, %c0_64, %c0_65] : memref<1x1x128xf32, #tpu.memory_space<vmem>>, vector<1x1x128xf32>
    %149 = vector.shape_cast %148 : vector<1x1x128xf32> to vector<1x128xf32>
    %150 = vector.broadcast %149 : vector<1x128xf32> to vector<32x128xf32>
    %151 = arith.addf %147, %150 : vector<32x128xf32>
    %152 = arith.addf %133, %151 : vector<32x128xf32>
    %c0_66 = arith.constant 0 : index
    %c0_67 = arith.constant 0 : index
    %c0_68 = arith.constant 0 : index
    %153 = vector.load %arg16[%c0_66, %c0_67, %c0_68] : memref<1x1x128xf32, #tpu.memory_space<vmem>>, vector<1x1x128xf32>
    %154 = vector.shape_cast %153 : vector<1x1x128xf32> to vector<1x128xf32>
    %c0_69 = arith.constant 0 : index
    %c0_70 = arith.constant 0 : index
    %c0_71 = arith.constant 0 : index
    %155 = vector.load %arg17[%c0_69, %c0_70, %c0_71] : memref<1x1x128xf32, #tpu.memory_space<vmem>>, vector<1x1x128xf32>
    %156 = vector.shape_cast %155 : vector<1x1x128xf32> to vector<1x128xf32>
    %cst_72 = arith.constant dense<0.000000e+00> : vector<32xf32>
    %157 = vector.multi_reduction <add>, %152, %cst_72 [1] : vector<32x128xf32> to vector<32xf32>
    %158 = vector.shape_cast %157 : vector<32xf32> to vector<32x1xf32>
    %cst_73 = arith.constant 1.280000e+02 : f32
    %159 = vector.broadcast %cst_73 : f32 to vector<32x1xf32>
    %160 = arith.divf %158, %159 : vector<32x1xf32>
    %161 = vector.broadcast %160 : vector<32x1xf32> to vector<32x128xf32>
    %162 = arith.subf %152, %161 : vector<32x128xf32>
    %163 = arith.mulf %162, %162 : vector<32x128xf32>
    %cst_74 = arith.constant dense<0.000000e+00> : vector<32xf32>
    %164 = vector.multi_reduction <add>, %163, %cst_74 [1] : vector<32x128xf32> to vector<32xf32>
    %165 = vector.shape_cast %164 : vector<32xf32> to vector<32x1xf32>
    %cst_75 = arith.constant 1.280000e+02 : f32
    %166 = vector.broadcast %cst_75 : f32 to vector<32x1xf32>
    %167 = arith.divf %165, %166 : vector<32x1xf32>
    %168 = vector.broadcast %160 : vector<32x1xf32> to vector<32x128xf32>
    %169 = arith.subf %152, %168 : vector<32x128xf32>
    %cst_76 = arith.constant 9.99999974E-6 : f32
    %170 = vector.broadcast %cst_76 : f32 to vector<32x1xf32>
    %171 = arith.addf %167, %170 : vector<32x1xf32>
    %172 = math.rsqrt %171 : vector<32x1xf32>
    %173 = vector.broadcast %172 : vector<32x1xf32> to vector<32x128xf32>
    %174 = arith.mulf %169, %173 : vector<32x128xf32>
    %175 = vector.broadcast %154 : vector<1x128xf32> to vector<32x128xf32>
    %176 = arith.mulf %174, %175 : vector<32x128xf32>
    %177 = vector.broadcast %156 : vector<1x128xf32> to vector<32x128xf32>
    %178 = arith.addf %176, %177 : vector<32x128xf32>
    %c0_77 = arith.constant 0 : index
    %c0_78 = arith.constant 0 : index
    %179 = vector.load %arg21[%c0_77, %c0_78] : memref<32x128xf32, #tpu.memory_space<vmem>>, vector<32x128xf32>
    tpu.vector_store %arg21[%c0_77, %c0_78], %178 {strides = array<i32>} : memref<32x128xf32, #tpu.memory_space<vmem>>, vector<32x128xf32>,
    %c1_i32 = arith.constant 1 : i32
    %180 = arith.cmpi eq, %arg1, %c1_i32 : i32
    %181 = arith.extui %180 : i1 to i32
    %c0_i32_79 = arith.constant 0 : i32
    %182 = arith.cmpi ne, %181, %c0_i32_79 : i32
    scf.if %182 {
      %c0_80 = arith.constant 0 : index
      %c0_81 = arith.constant 0 : index
      %183 = vector.load %arg18[%c0_80, %c0_81] : memref<1x128xf32, #tpu.memory_space<vmem>>, vector<1x128xf32>
      %c0_82 = arith.constant 0 : index
      %c0_83 = arith.constant 0 : index
      %184 = vector.load %arg19[%c0_82, %c0_83] : memref<1x128xf32, #tpu.memory_space<vmem>>, vector<1x128xf32>
      %cst_84 = arith.constant dense<0.000000e+00> : vector<32xf32>
      %185 = vector.multi_reduction <add>, %178, %cst_84 [1] : vector<32x128xf32> to vector<32xf32>
      %186 = vector.shape_cast %185 : vector<32xf32> to vector<32x1xf32>
      %cst_85 = arith.constant 1.280000e+02 : f32
      %187 = vector.broadcast %cst_85 : f32 to vector<32x1xf32>
      %188 = arith.divf %186, %187 : vector<32x1xf32>
      %189 = vector.broadcast %188 : vector<32x1xf32> to vector<32x128xf32>
      %190 = arith.subf %178, %189 : vector<32x128xf32>
      %191 = arith.mulf %190, %190 : vector<32x128xf32>
      %cst_86 = arith.constant dense<0.000000e+00> : vector<32xf32>
      %192 = vector.multi_reduction <add>, %191, %cst_86 [1] : vector<32x128xf32> to vector<32xf32>
      %193 = vector.shape_cast %192 : vector<32xf32> to vector<32x1xf32>
      %cst_87 = arith.constant 1.280000e+02 : f32
      %194 = vector.broadcast %cst_87 : f32 to vector<32x1xf32>
      %195 = arith.divf %193, %194 : vector<32x1xf32>
      %196 = vector.broadcast %188 : vector<32x1xf32> to vector<32x128xf32>
      %197 = arith.subf %178, %196 : vector<32x128xf32>
      %cst_88 = arith.constant 9.99999974E-6 : f32
      %198 = vector.broadcast %cst_88 : f32 to vector<32x1xf32>
      %199 = arith.addf %195, %198 : vector<32x1xf32>
      %200 = math.rsqrt %199 : vector<32x1xf32>
      %201 = vector.broadcast %200 : vector<32x1xf32> to vector<32x128xf32>
      %202 = arith.mulf %197, %201 : vector<32x128xf32>
      %203 = vector.broadcast %183 : vector<1x128xf32> to vector<32x128xf32>
      %204 = arith.mulf %202, %203 : vector<32x128xf32>
      %205 = vector.broadcast %184 : vector<1x128xf32> to vector<32x128xf32>
      %206 = arith.addf %204, %205 : vector<32x128xf32>
      %207 = vector.shape_cast %206 : vector<32x128xf32> to vector<2x16x128xf32>
      %c0_89 = arith.constant 0 : index
      %c0_90 = arith.constant 0 : index
      %c0_91 = arith.constant 0 : index
      %208 = vector.load %arg20[%c0_89, %c0_90, %c0_91] : memref<2x16x128xf32, #tpu.memory_space<vmem>>, vector<2x16x128xf32>
      tpu.vector_store %arg20[%c0_89, %c0_90, %c0_91], %207 {strides = array<i32>} : memref<2x16x128xf32, #tpu.memory_space<vmem>>, vector<2x16x128xf32>,
    } else {
    }
    return
  }
  func.func @transform_0(%arg0: i32, %arg1: i32) -> (i32, i32, i32) {
    %c0_i32 = arith.constant 0 : i32
    %c0_i32_0 = arith.constant 0 : i32
    %c0_i32_1 = arith.constant 0 : i32
    return %arg0, %c0_i32, %c0_i32_0 : i32, i32, i32
  }
  func.func @transform_1(%arg0: i32, %arg1: i32) -> (i32, i32) {
    %c0_i32 = arith.constant 0 : i32
    %c0_i32_0 = arith.constant 0 : i32
    %c0_i32_1 = arith.constant 0 : i32
    return %c0_i32, %c0_i32_0 : i32, i32
  }
  func.func @transform_2(%arg0: i32, %arg1: i32) -> (i32, i32, i32) {
    %c0_i32 = arith.constant 0 : i32
    %c0_i32_0 = arith.constant 0 : i32
    %c0_i32_1 = arith.constant 0 : i32
    return %arg1, %c0_i32, %c0_i32_0 : i32, i32, i32
  }
  func.func @transform_3(%arg0: i32, %arg1: i32) -> (i32, i32, i32) {
    %c0_i32 = arith.constant 0 : i32
    %c0_i32_0 = arith.constant 0 : i32
    %c0_i32_1 = arith.constant 0 : i32
    return %arg1, %c0_i32, %c0_i32_0 : i32, i32, i32
  }
  func.func @transform_4(%arg0: i32, %arg1: i32) -> (i32, i32, i32) {
    %c0_i32 = arith.constant 0 : i32
    %c0_i32_0 = arith.constant 0 : i32
    %c0_i32_1 = arith.constant 0 : i32
    return %arg1, %c0_i32, %c0_i32_0 : i32, i32, i32
  }
  func.func @transform_5(%arg0: i32, %arg1: i32) -> (i32, i32, i32) {
    %c0_i32 = arith.constant 0 : i32
    %c0_i32_0 = arith.constant 0 : i32
    %c0_i32_1 = arith.constant 0 : i32
    return %arg1, %c0_i32, %c0_i32_0 : i32, i32, i32
  }
  func.func @transform_6(%arg0: i32, %arg1: i32) -> (i32, i32, i32) {
    %c0_i32 = arith.constant 0 : i32
    %c0_i32_0 = arith.constant 0 : i32
    %c0_i32_1 = arith.constant 0 : i32
    return %arg1, %c0_i32, %c0_i32_0 : i32, i32, i32
  }
  func.func @transform_7(%arg0: i32, %arg1: i32) -> (i32, i32, i32) {
    %c0_i32 = arith.constant 0 : i32
    %c0_i32_0 = arith.constant 0 : i32
    %c0_i32_1 = arith.constant 0 : i32
    return %arg1, %c0_i32, %c0_i32_0 : i32, i32, i32
  }
  func.func @transform_8(%arg0: i32, %arg1: i32) -> (i32, i32, i32) {
    %c0_i32 = arith.constant 0 : i32
    %c0_i32_0 = arith.constant 0 : i32
    %c0_i32_1 = arith.constant 0 : i32
    return %arg1, %c0_i32, %c0_i32_0 : i32, i32, i32
  }
  func.func @transform_9(%arg0: i32, %arg1: i32) -> (i32, i32, i32) {
    %c0_i32 = arith.constant 0 : i32
    %c0_i32_0 = arith.constant 0 : i32
    %c0_i32_1 = arith.constant 0 : i32
    return %arg1, %c0_i32, %c0_i32_0 : i32, i32, i32
  }
  func.func @transform_10(%arg0: i32, %arg1: i32) -> (i32, i32, i32) {
    %c0_i32 = arith.constant 0 : i32
    %c0_i32_0 = arith.constant 0 : i32
    %c0_i32_1 = arith.constant 0 : i32
    return %arg1, %c0_i32, %c0_i32_0 : i32, i32, i32
  }
  func.func @transform_11(%arg0: i32, %arg1: i32) -> (i32, i32, i32) {
    %c0_i32 = arith.constant 0 : i32
    %c0_i32_0 = arith.constant 0 : i32
    %c0_i32_1 = arith.constant 0 : i32
    return %arg1, %c0_i32, %c0_i32_0 : i32, i32, i32
  }
  func.func @transform_12(%arg0: i32, %arg1: i32) -> (i32, i32, i32) {
    %c0_i32 = arith.constant 0 : i32
    %c0_i32_0 = arith.constant 0 : i32
    %c0_i32_1 = arith.constant 0 : i32
    return %arg1, %c0_i32, %c0_i32_0 : i32, i32, i32
  }
  func.func @transform_13(%arg0: i32, %arg1: i32) -> (i32, i32, i32) {
    %c0_i32 = arith.constant 0 : i32
    %c0_i32_0 = arith.constant 0 : i32
    %c0_i32_1 = arith.constant 0 : i32
    return %arg1, %c0_i32, %c0_i32_0 : i32, i32, i32
  }
  func.func @transform_14(%arg0: i32, %arg1: i32) -> (i32, i32, i32) {
    %c0_i32 = arith.constant 0 : i32
    %c0_i32_0 = arith.constant 0 : i32
    %c0_i32_1 = arith.constant 0 : i32
    return %arg1, %c0_i32, %c0_i32_0 : i32, i32, i32
  }
  func.func @transform_15(%arg0: i32, %arg1: i32) -> (i32, i32, i32) {
    %c0_i32 = arith.constant 0 : i32
    %c0_i32_0 = arith.constant 0 : i32
    %c0_i32_1 = arith.constant 0 : i32
    return %arg1, %c0_i32, %c0_i32_0 : i32, i32, i32
  }
  func.func @transform_16(%arg0: i32, %arg1: i32) -> (i32, i32) {
    %c0_i32 = arith.constant 0 : i32
    %c0_i32_0 = arith.constant 0 : i32
    %c0_i32_1 = arith.constant 0 : i32
    return %c0_i32, %c0_i32_0 : i32, i32
  }
  func.func @transform_17(%arg0: i32, %arg1: i32) -> (i32, i32) {
    %c0_i32 = arith.constant 0 : i32
    %c0_i32_0 = arith.constant 0 : i32
    %c0_i32_1 = arith.constant 0 : i32
    return %c0_i32, %c0_i32_0 : i32, i32
  }
  func.func @transform_18(%arg0: i32, %arg1: i32) -> (i32, i32, i32) {
    %c0_i32 = arith.constant 0 : i32
    %c0_i32_0 = arith.constant 0 : i32
    %c0_i32_1 = arith.constant 0 : i32
    return %arg0, %c0_i32, %c0_i32_0 : i32, i32, i32
  }
}

</mosaic_0001>

<bundles_post_ra>
// kernel: tpu_custom_call.1
= control target key start
LH: loop header
LB: loop body
LE: loop exit
PB: predicated region body
PF: predicated region fallthrough
CT: control target
= control target key end

     0   :  { %s5040_s0 = inlined_call_operand.hbm [shape: f32[2,16,128], index: 0, kind: input, shape index: {}]   ;;  %s5041_s1 = inlined_call_operand.hbm [shape: f32[16,128], index: 1, kind: input, shape index: {}]   ;;  %s5042_s2 = inlined_call_operand.hbm [shape: bf16[2,128,256], index: 2, kind: input, shape index: {}]   ;;  %s5043_s3 = inlined_call_operand.vmem [shape: f32[2,1,256], index: 3, kind: input, shape index: {}]   ;;  %s5044_s4 = inlined_call_operand.hbm [shape: bf16[2,128,128], index: 4, kind: input, shape index: {}]   ;;  %s5045_s5 = inlined_call_operand.vmem [shape: f32[2,1,128], index: 5, kind: input, shape index: {}]   ;;  %s5046_s6 = inlined_call_operand.hbm [shape: bf16[2,128,128], index: 6, kind: input, shape index: {}]   ;;  %s5047_s7 = inlined_call_operand.vmem [shape: f32[2,1,128], index: 7, kind: input, shape index: {}]   ;;  %s5048_s8 = inlined_call_operand.vmem [shape: f32[2,1,128], index: 8, kind: input, shape index: {}]   ;;  %s5049_s9 = inlined_call_operand.vmem [shape: f32[2,1,128], index: 9, kind: input, shape index: {}]   ;;  %s5050_s10 = inlined_call_operand.hbm [shape: bf16[2,128,256], index: 10, kind: input, shape index: {}]   ;;  %s5051_s11 = inlined_call_operand.vmem [shape: f32[2,1,256], index: 11, kind: input, shape index: {}]   ;;  %s5052_s12 = inlined_call_operand.hbm [shape: bf16[2,256,128], index: 12, kind: input, shape index: {}]   ;;  %s5053_s13 = inlined_call_operand.vmem [shape: f32[2,1,128], index: 13, kind: input, shape index: {}]   ;;  %s5054_s14 = inlined_call_operand.vmem [shape: f32[2,1,128], index: 14, kind: input, shape index: {}]   ;;  %s5055_s15 = inlined_call_operand.vmem [shape: f32[2,1,128], index: 15, kind: input, shape index: {}]   ;;  %s5056_s16 = inlined_call_operand.vmem [shape: f32[1,128], index: 16, kind: input, shape index: {}]   ;;  %s5057_s17 = inlined_call_operand.vmem [shape: f32[1,128], index: 17, kind: input, shape index: {}]   ;;  %s5058_s18 = inlined_call_operand.hbm [shape: f32[2,16,128], index: 18, kind: output, shape index: {}]  }
   0x1   :  { %5087 = sst [smem:[#allocation23_spill]] %s5040_s0 }
   0x2   :  { %5088 = sst [smem:[#allocation24_spill]] %s5041_s1 }
   0x3   :  { %5089 = sst [smem:[#allocation25_spill]] %s5042_s2 }
   0x4   :  { %5090 = sst [smem:[#allocation26_spill]] %s5043_s3 }
   0x5   :  { %5091 = sst [smem:[#allocation27_spill]] %s5044_s4 }
   0x6   :  { %5092 = sst [smem:[#allocation28_spill]] %s5046_s6 }
   0x7   :  { %5093 = sst [smem:[#allocation29_spill]] %s5047_s7 }
   0x8   :  { %5094 = sst [smem:[#allocation30_spill]] %s5048_s8 }
   0x9   :  { %5095 = sst [smem:[#allocation31_spill]] %s5049_s9 }
   0xa   :  { %5096 = sst [smem:[#allocation32_spill]] %s5050_s10 }
   0xb   :  { %5097 = sst [smem:[#allocation33_spill]] %s5051_s11 }
   0xc   :  { %5098 = sst [smem:[#allocation34_spill]] %s5052_s12 }
   0xd   :  { %5099 = sst [smem:[#allocation35_spill]] %s5053_s13 }
   0xe   :  { %5100 = sst [smem:[#allocation36_spill]] %s5054_s14 }
   0xf   :  { %5101 = sst [smem:[#allocation37_spill]] %s5055_s15 }
  0x10   :  { %5102 = sst [smem:[#allocation38_spill]] %s5056_s16 }
  0x11   :  { %5103 = sst [smem:[#allocation39_spill]] %s5057_s17 }
  0x12   :  { %5104 = sst [smem:[#allocation40_spill]] %s5058_s18 }
  0x13   :  { %23 = vsyncpa [#allocation4], 0 }
  0x14   :  { %24 = vsyncpa [#allocation7], 0 }
  0x15   :  { %25 = vsyncpa [#allocation5], 0  ;;  %s4241_s27 = smov 0   ;;  %s4243_s28 = smov 0  }
  0x16   :  { %s4245_s29 = smov 0   ;;  %s4247_s30 = smov 0  }
  0x17   :  { %s4249_s0 = smov 0   ;;  %s4251_s19 = smov 0  }
  0x18 LB: > { %5105 = sst [smem:[#allocation18_spill]] %s4112_s29  ;;  %s4270_s1 = sadd.s32 4294967295, %s4124_s19   ;;  %s4124_s19 = sphi %s4251_s19, %s31_s19   ;;  %s4120_s0 = sphi %s4249_s0, %s5163_s0   ;;  %s4116_s30 = sphi %s4247_s30, %s5162_s30   ;;  %s4112_s29 = sphi %s4245_s29, %s5161_s29   ;;  %s4108_s28 = sphi %s4243_s28, %s5165_s28   ;;  %s4104_s27 = sphi %s4241_s27, %s5164_s27  }
  0x19   : > { %5106 = sst [smem:[#allocation19_spill]] %s4120_s0  ;;  %p104_p0 = scmp.ne.s32.totalorder %s4112_s29, %s4108_s28 }
  0x1a   : > { %5107 = sst [smem:[#allocation20_spill]] %s4124_s19  ;;  %p105_p1 = scmp.eq.s32.totalorder %s4124_s19, 0 }
  0x1b   : > { %p110_p2 = scmp.ne.s32.totalorder %s4108_s28, %s4104_s27  ;;  %p5063_p3 = scmp.eq.s32.totalorder %s4270_s1, 0 }
  0x1c   : > { %p106_p4 = por %p105_p1, %p104_p0  ;;  %p3198_p5 = scmp.ge.s32.totalorder %s4124_s19, 1 }
  0x1d   : > { %p4281_p6 = por %p5063_p3, %p110_p2  ;;  %p527_p7 = scmp.lt.s32.totalorder %s4124_s19, 3 }
  0x1e   : > { %s4126_s2 = smov [#allocation3]   ;;  %p3590_p10 = scmp.lt.s32.totalorder %s4124_s19, 2 }
  0x1f   : > { %s5108_s21 = scalar_select %p4281_p6, 1, 0 }
  0x20   : > { %p4286_p8 = pnand %p3198_p5, %p527_p7  ;;  %s543_s23 = sshll.u32 %s4126_s2, 4  ;;  %s544_s23 = int_to_ptr.vmem [resolvable:$true] %s543_s23 }
  0x21   : > { %p4299_p12 = pnand %p3590_p10, %p106_p4  ;;  %s40_s26 = sadd.s32 1, %s4120_s0 }
  0x22   : > { %s5109_s22 = scalar_select %p4286_p8, 1, 0 }
  0x23   : > { %p3565_p9 = pneg %p4286_p8  ;;  %s5112_s18 = sld [smem:[#allocation23_spill]] }
  0x24   : > { %s5111_s25 = scalar_select %p4299_p12, 1, 0 }
  0x25   : > { %p4295_p11 = pnand %p3565_p9, %p5063_p3 }
  0x27   : > { %s5110_s24 = scalar_select %p4295_p11, 1, 0 }
  0x28   : > { %p5073_p0 = pneg %p4295_p11 }
  0x29   : > { %s3830_s2 = scalar_lea.hbm %s5112_s18, 512 }
  0x2a   : > { %p3831_p13 = scmp.ne.s32.totalorder %s5112_s18, %s3830_s2  ;;  %p3837_p4 = scmp.lt.u32.totalorder %s3830_s2, %s5112_s18 }
  0x2c   : > { %p3833_p1 = pnand %p5073_p0, %p3831_p13 }
  0x2e   : > { %p3834_p2 = pneg %p3833_p1 }
  0x30   : > { %p3839_p5 = pnand %p3837_p4, %p3834_p2 }
  0x32   : > { %3842 = shalt.err (!%p3839_p5)
}
  0x33   : > { %s3843_s13 = scalar_lea.vmem %s544_s23, 512  ;;  %p3851_p3 = scmp.lt.s32.totalorder %s544_s23, %s544_s23 }
  0x34   : > { %p3844_p7 = scmp.ne.s32.totalorder %s544_s23, %s3843_s13  ;;  %p3852_p6 = scmp.lt.s32.totalorder %s3843_s13, %s3843_s13 }
  0x36   : > { %p3846_p9 = pnand %p3844_p7, %p5073_p0  ;;  %p3853_p8 = por %p3852_p6, %p3851_p3 }
  0x38   : > { %p3847_p10 = pneg %p3846_p9 }
  0x3a   : > { %p3854_p12 = pnand %p3853_p8, %p3847_p10 }
  0x3c   : > { %3857 = shalt.err (!%p3854_p12)
}
  0x3d   : > { %s5067_s16 = smov 128   ;;  %s5069_s14 = smov 8  }
  0x3e   : > { %3568 = dma.hbm_to_vmem [thread:$0]  (!%p4295_p11), %s5112_s18, 512, %s544_s23, [#allocation4], %s5067_s16, %s5067_s16, %s5069_s14  }
  0x3f   : > { %p41_p3 = scmp.ge.s32.totalorder %s40_s26, 2  ;;  %s576_s13 = sand.u32 1, %s4124_s19  }
  0x40   : > { %s578_s20 = sand.u32 1, %s4112_s29   ;;  %s4338_s11 = sshll.u32 %s4120_s0, 11 }
  0x41   : > { %s5167_s26 = smov (%p41_p3, %s40_s26), 0  ;;  %s4333_s27 = sshll.u32 %s578_s20, 7 }
  0x42   : > { %5113 = sst [smem:[#allocation21_spill]] %s5167_s26  ;;  %s94_s2 = ssub.s32 %s4120_s0, %s5167_s26 }
  0x43   : > { %p95_p6 = scmp.eq.s32.totalorder %s94_s2, 0  ;;  %s5114_s7 = sld [smem:[#allocation25_spill]] }
  0x44   : > { %s580_s23 = scalar_lea.vmem [#allocation8], %s4333_s27  ;;  %s5115_s16 = sadd.s32 1, %s4112_s29 }
  0x45   : > { %s587_s17 = sshll.u32 %s580_s23, 4  ;;  %s4354_s2 = sshll.u32 %s578_s20, 6  ;;  %s4352_s17 = int_to_ptr.vmem [resolvable:$true] %s587_s17 }
  0x46   : > { %s4350_s14 = scalar_select %p95_p6, %s4112_s29, %s5115_s16  }
  0x47   : > { %s4356_s18 = scalar_lea.sflag [#allocation4], %s576_s13  ;;  %p5117_p12 = scmp.ne.s32.totalorder %s5111_s25, 0 }
  0x48   : > { %5116 = sst [smem:[#allocation22_spill]] %s4350_s14 }
  0x49   : > { %s4344_s15 = scalar_lea.hbm %s5114_s7, %s4338_s11  ;;  %p4362_p13 = pneg %p5117_p12 }
  0x4a   : > { %s3858_s26 = scalar_lea.hbm %s4344_s15, 2048  ;;  %s3863_s23 = scalar_lea.hbm %s5114_s7, 4096 }
  0x4b   : > { %p3859_p8 = scmp.ne.s32.totalorder %s4344_s15, %s3858_s26  ;;  %p3864_p4 = scmp.lt.u32.totalorder %s4344_s15, %s5114_s7 }
  0x4c   : > { %s5118_s8 = scalar_select %p4362_p13, 1, 0 }
  0x4d   : > { %p3861_p1 = pnand %p4362_p13, %p3859_p8  ;;  %p3865_p5 = scmp.lt.u32.totalorder %s3863_s23, %s3858_s26 }
  0x4e   : > { %p3867_p9 = scmp.lt.u32.totalorder %s3858_s26, %s4344_s15 }
  0x4f   : > { %p3862_p2 = pneg %p3861_p1  ;;  %p3866_p7 = por %p3865_p5, %p3864_p4 }
  0x51   : > { %p3868_p10 = por %p3867_p9, %p3866_p7 }
  0x53   : > { %p3869_p3 = pnand %p3868_p10, %p3862_p2 }
  0x55   : > { %3872 = shalt.err (!%p3869_p3)
}
  0x56   : > { %s3873_s13 = scalar_lea.vmem %s4352_s17, 2048  ;;  %s4129_s9 = smov [#allocation8]  }
  0x57   : > { %p3874_p6 = scmp.ne.s32.totalorder %s4352_s17, %s3873_s13  ;;  %s3878_s16 = sshll.u32 %s4129_s9, 4  ;;  %s3879_s16 = int_to_ptr.vmem [resolvable:$false] %s3878_s16 }
  0x58   : > { %s3880_s14 = scalar_lea.vmem %s3879_s16, 4096  ;;  %p3881_p0 = scmp.lt.s32.totalorder %s4352_s17, %s3879_s16 }
  0x59   : > { %p3876_p8 = pnand %p3874_p6, %p4362_p13  ;;  %p3882_p11 = scmp.lt.s32.totalorder %s3880_s14, %s3873_s13 }
  0x5b   : > { %p3877_p1 = pneg %p3876_p8  ;;  %p3883_p4 = por %p3882_p11, %p3881_p0 }
  0x5d   : > { %p3884_p5 = pnand %p3883_p4, %p3877_p1 }
  0x5f   : > { %3887 = shalt.err (!%p3884_p5)
}
  0x60   : > { %s5119_s26 = smov 8   ;;  %s5120_s23 = smov 128  }
  0x61   : > { %3575 = dma.hbm_to_vmem [thread:$0]  (!%p5117_p12), %s4344_s15, 2048, %s4352_s17, %s4356_s18, %s5120_s23, %s5120_s23, %s5119_s26  }
  0x62   : > { %s3323_s20 = sshll.u32 %s4120_s0, 10  ;;  %s5121_s4 = sld [smem:[#allocation27_spill]] }
  0x63   : > { %s608_s14 = scalar_lea.vmem [#allocation9], %s4354_s2 }
  0x64   : > { %s615_s7 = sshll.u32 %s608_s14, 4  ;;  %s4398_s7 = int_to_ptr.vmem [resolvable:$true] %s615_s7 }
  0x68   : > { %s4395_s16 = scalar_lea.hbm %s5121_s4, %s3323_s20  ;;  %s3893_s19 = scalar_lea.hbm %s5121_s4, 2048 }
  0x69   : > { %s3888_s29 = scalar_lea.hbm %s4395_s16, 1024  ;;  %p3894_p7 = scmp.lt.u32.totalorder %s4395_s16, %s5121_s4 }
  0x6a   : > { %p3889_p11 = scmp.ne.s32.totalorder %s4395_s16, %s3888_s29  ;;  %p3895_p9 = scmp.lt.u32.totalorder %s3893_s19, %s3888_s29 }
  0x6b   : > { %p3897_p3 = scmp.lt.u32.totalorder %s3888_s29, %s4395_s16 }
  0x6c   : > { %p3891_p0 = pnand %p3889_p11, %p4362_p13  ;;  %p3896_p10 = por %p3895_p9, %p3894_p7 }
  0x6e   : > { %p3892_p2 = pneg %p3891_p0  ;;  %p3898_p6 = por %p3897_p3, %p3896_p10 }
  0x70   : > { %p3899_p8 = pnand %p3898_p6, %p3892_p2 }
  0x72   : > { %3902 = shalt.err (!%p3899_p8)
}
  0x73   : > { %s3903_s14 = scalar_lea.vmem %s4398_s7, 1024  ;;  %s4130_s15 = smov [#allocation9]  }
  0x74   : > { %p3904_p1 = scmp.ne.s32.totalorder %s4398_s7, %s3903_s14  ;;  %s3908_s17 = sshll.u32 %s4130_s15, 4  ;;  %s3909_s17 = int_to_ptr.vmem [resolvable:$false] %s3908_s17 }
  0x75   : > { %s3910_s9 = scalar_lea.vmem %s3909_s17, 2048  ;;  %p3911_p11 = scmp.lt.s32.totalorder %s4398_s7, %s3909_s17 }
  0x76   : > { %p3906_p4 = pnand %p3904_p1, %p4362_p13  ;;  %p3912_p0 = scmp.lt.s32.totalorder %s3910_s9, %s3903_s14 }
  0x78   : > { %p3907_p5 = pneg %p3906_p4  ;;  %p3913_p7 = por %p3912_p0, %p3911_p11 }
  0x7a   : > { %p3914_p9 = pnand %p3913_p7, %p3907_p5 }
  0x7c   : > { %3917 = shalt.err (!%p3914_p9)
}
  0x7d   : > { %s5079_s29 = smov 64   ;;  %s5081_s19 = smov 4  }
  0x7e   : > { %3578 = dma.hbm_to_vmem [thread:$0]  (!%p5117_p12), %s4395_s16, 1024, %s4398_s7, %s4356_s18, %s5079_s29, %s5079_s29, %s5081_s19  }
  0x7f   : > { %s5122_s6 = sld [smem:[#allocation28_spill]]  ;;  %s635_s17 = scalar_lea.vmem [#allocation10], %s4354_s2 }
  0x80   : > { %s642_s9 = sshll.u32 %s635_s17, 4  ;;  %s4433_s9 = int_to_ptr.vmem [resolvable:$true] %s642_s9 }
  0x85   : > { %s4430_s15 = scalar_lea.hbm %s5122_s6, %s3323_s20  ;;  %s3923_s29 = scalar_lea.hbm %s5122_s6, 2048 }
  0x86   : > { %s3918_s4 = scalar_lea.hbm %s4430_s15, 1024  ;;  %p3924_p6 = scmp.lt.u32.totalorder %s4430_s15, %s5122_s6 }
  0x87   : > { %p3919_p2 = scmp.ne.s32.totalorder %s4430_s15, %s3918_s4  ;;  %p3925_p8 = scmp.lt.u32.totalorder %s3923_s29, %s3918_s4 }
  0x88   : > { %p3927_p4 = scmp.lt.u32.totalorder %s3918_s4, %s4430_s15 }
  0x89   : > { %p3921_p10 = pnand %p3919_p2, %p4362_p13  ;;  %p3926_p1 = por %p3925_p8, %p3924_p6 }
  0x8b   : > { %p3922_p3 = pneg %p3921_p10  ;;  %p3928_p5 = por %p3927_p4, %p3926_p1 }
  0x8d   : > { %p3929_p11 = pnand %p3928_p5, %p3922_p3 }
  0x8f   : > { %3932 = shalt.err (!%p3929_p11)
}
  0x90   : > { %s3933_s2 = scalar_lea.vmem %s4433_s9, 1024  ;;  %s4133_s14 = smov [#allocation10]  }
  0x91   : > { %p3934_p0 = scmp.ne.s32.totalorder %s4433_s9, %s3933_s2  ;;  %s3938_s17 = sshll.u32 %s4133_s14, 4  ;;  %s3939_s17 = int_to_ptr.vmem [resolvable:$false] %s3938_s17 }
  0x92   : > { %s3940_s7 = scalar_lea.vmem %s3939_s17, 2048  ;;  %p3941_p2 = scmp.lt.s32.totalorder %s4433_s9, %s3939_s17 }
  0x93   : > { %p3936_p7 = pnand %p3934_p0, %p4362_p13  ;;  %p3942_p10 = scmp.lt.s32.totalorder %s3940_s7, %s3933_s2 }
  0x95   : > { %p3937_p9 = pneg %p3936_p7  ;;  %p3943_p6 = por %p3942_p10, %p3941_p2 }
  0x97   : > { %p3944_p8 = pnand %p3943_p6, %p3937_p9 }
  0x99   : > { %3947 = shalt.err (!%p3944_p8)
}
  0x9a   : > { %s5123_s4 = smov 64   ;;  %s5124_s10 = sld [smem:[#allocation32_spill]] }
  0x9b   : > { %3581 = dma.hbm_to_vmem [thread:$0]  (!%p5117_p12), %s4430_s15, 1024, %s4433_s9, %s4356_s18, %s5123_s4, %s5123_s4, %s5081_s19  }
  0x9c   : > { %s674_s20 = scalar_lea.vmem [#allocation11], %s4333_s27 }
  0x9d   : > { %s681_s2 = sshll.u32 %s674_s20, 4  ;;  %s4467_s2 = int_to_ptr.vmem [resolvable:$true] %s681_s2 }
  0xa0   : > { %s4464_s13 = scalar_lea.hbm %s5124_s10, %s4338_s11  ;;  %s3953_s9 = scalar_lea.hbm %s5124_s10, 4096 }
  0xa1   : > { %s3948_s14 = scalar_lea.hbm %s4464_s13, 2048  ;;  %p3954_p5 = scmp.lt.u32.totalorder %s4464_s13, %s5124_s10 }
  0xa2   : > { %p3949_p3 = scmp.ne.s32.totalorder %s4464_s13, %s3948_s14  ;;  %p3955_p11 = scmp.lt.u32.totalorder %s3953_s9, %s3948_s14 }
  0xa3   : > { %p3957_p7 = scmp.lt.u32.totalorder %s3948_s14, %s4464_s13 }
  0xa4   : > { %p3951_p1 = pnand %p3949_p3, %p4362_p13  ;;  %p3956_p0 = por %p3955_p11, %p3954_p5 }
  0xa6   : > { %p3952_p4 = pneg %p3951_p1  ;;  %p3958_p9 = por %p3957_p7, %p3956_p0 }
  0xa8   : > { %p3959_p2 = pnand %p3958_p9, %p3952_p4 }
  0xaa   : > { %3962 = shalt.err (!%p3959_p2)
}
  0xab   : > { %s3963_s16 = scalar_lea.vmem %s4467_s2, 2048  ;;  %s4134_s20 = smov [#allocation11]  }
  0xac   : > { %p3964_p10 = scmp.ne.s32.totalorder %s4467_s2, %s3963_s16  ;;  %s3968_s17 = sshll.u32 %s4134_s20, 4  ;;  %s3969_s17 = int_to_ptr.vmem [resolvable:$false] %s3968_s17 }
  0xad   : > { %s3970_s15 = scalar_lea.vmem %s3969_s17, 4096  ;;  %p3971_p3 = scmp.lt.s32.totalorder %s4467_s2, %s3969_s17 }
  0xae   : > { %p3966_p6 = pnand %p3964_p10, %p4362_p13  ;;  %p3972_p1 = scmp.lt.s32.totalorder %s3970_s15, %s3963_s16 }
  0xb0   : > { %p3967_p8 = pneg %p3966_p6  ;;  %p3973_p5 = por %p3972_p1, %p3971_p3 }
  0xb2   : > { %p3974_p11 = pnand %p3973_p5, %p3967_p8 }
  0xb4   : > { %3977 = shalt.err (!%p3974_p11)
}
  0xb5   : > { %3584 = dma.hbm_to_vmem [thread:$0]  (!%p5117_p12), %s4464_s13, 2048, %s4467_s2, %s4356_s18, %s5120_s23, %s5120_s23, %s5119_s26  }
  0xb6   : > { %s4135_s14 = smov [#allocation6]   ;;  %s5125_s12 = sld [smem:[#allocation34_spill]] }
  0xb7   : > { %s556_s9 = sshll.u32 %s4135_s14, 4  ;;  %s5126_s15 = sld [smem:[#allocation24_spill]]  ;;  %s557_s9 = int_to_ptr.vmem [resolvable:$true] %s556_s9 }
  0xb8   : > { %p5127_p0 = scmp.ne.s32.totalorder %s5110_s24, 0 }
  0xba   : > { %p5128_p7 = pneg %p5127_p0 }
  0xbc   : > { %s4498_s16 = scalar_lea.hbm %s5125_s12, %s4338_s11 }
  0xbd   : > { %s3978_s19 = scalar_lea.hbm %s5126_s15, 256 }
  0xbe   : > { %p3979_p4 = scmp.ne.s32.totalorder %s5126_s15, %s3978_s19  ;;  %p3985_p10 = scmp.lt.u32.totalorder %s3978_s19, %s5126_s15 }
  0xc0   : > { %p3981_p9 = pnand %p3979_p4, %p5128_p7 }
  0xc2   : > { %p3982_p2 = pneg %p3981_p9 }
  0xc4   : > { %p3987_p6 = pnand %p3985_p10, %p3982_p2 }
  0xc6   : > { %3990 = shalt.err (!%p3987_p6)
}
  0xc7   : > { %s3991_s11 = scalar_lea.vmem %s557_s9, 256  ;;  %p5129_p3 = pmov %p5128_p7 }
  0xc8   : > { %p3992_p8 = scmp.ne.s32.totalorder %s557_s9, %s3991_s11  ;;  %p3999_p11 = scmp.lt.s32.totalorder %s557_s9, %s557_s9 }
  0xc9   : > { %p4000_p12 = scmp.lt.s32.totalorder %s3991_s11, %s3991_s11 }
  0xca   : > { %p3994_p1 = pnand %p3992_p8, %p5129_p3 }
  0xcb   : > { %p4001_p13 = por %p4000_p12, %p3999_p11 }
  0xcc   : > { %p3995_p5 = pneg %p3994_p1 }
  0xce   : > { %p4002_p4 = pnand %p4001_p13, %p3995_p5 }
  0xd0   : > { %4005 = shalt.err (!%p4002_p4)
}
  0xd1   : > { %3571 = dma.hbm_to_vmem [thread:$0]  (!%p5127_p0), %s5126_s15, 256, %s557_s9, [#allocation7], %s5120_s23, %s5120_s23, %s5119_s26  }
  0xd2   : > { %s702_s19 = scalar_lea.vmem [#allocation12], %s4333_s27  ;;  %s4006_s7 = scalar_lea.hbm %s4498_s16, 2048 }
  0xd3   : > { %s709_s14 = sshll.u32 %s702_s19, 4  ;;  %p4007_p12 = scmp.ne.s32.totalorder %s4498_s16, %s4006_s7  ;;  %s4524_s14 = int_to_ptr.vmem [resolvable:$true] %s709_s14 }
  0xd4   : > { %p5130_p13 = scmp.ne.s32.totalorder %s5118_s8, 0  ;;  %s4011_s20 = scalar_lea.hbm %s5125_s12, 4096 }
  0xd5   : > { %p4012_p2 = scmp.lt.u32.totalorder %s4498_s16, %s5125_s12  ;;  %p4013_p10 = scmp.lt.u32.totalorder %s4011_s20, %s4006_s7 }
  0xd6   : > { %p4009_p7 = pnand %p4007_p12, %p5130_p13  ;;  %p4015_p0 = scmp.lt.u32.totalorder %s4006_s7, %s4498_s16 }
  0xd7   : > { %p4014_p6 = por %p4013_p10, %p4012_p2 }
  0xd8   : > { %p4010_p9 = pneg %p4009_p7 }
  0xd9   : > { %p4016_p8 = por %p4015_p0, %p4014_p6 }
  0xdb   : > { %p4017_p3 = pnand %p4016_p8, %p4010_p9 }
  0xdd   : > { %4020 = shalt.err (!%p4017_p3)
}
  0xde   : > { %s4021_s27 = scalar_lea.vmem %s4524_s14, 2048  ;;  %s4136_s26 = smov [#allocation12]  }
  0xdf   : > { %p4022_p1 = scmp.ne.s32.totalorder %s4524_s14, %s4021_s27  ;;  %s4026_s23 = sshll.u32 %s4136_s26, 4  ;;  %s4027_s23 = int_to_ptr.vmem [resolvable:$false] %s4026_s23 }
  0xe0   : > { %s4028_s9 = scalar_lea.vmem %s4027_s23, 4096  ;;  %p4029_p4 = scmp.lt.s32.totalorder %s4524_s14, %s4027_s23 }
  0xe1   : > { %p4024_p5 = pnand %p4022_p1, %p5130_p13  ;;  %p4030_p12 = scmp.lt.s32.totalorder %s4028_s9, %s4021_s27 }
  0xe3   : > { %p4025_p11 = pneg %p4024_p5  ;;  %p4031_p7 = por %p4030_p12, %p4029_p4 }
  0xe5   : > { %p4032_p2 = pnand %p4031_p7, %p4025_p11 }
  0xe7   : > { %4035 = shalt.err (!%p4032_p2)
}
  0xe8   : > { %p5131_p9 = scmp.ne.s32.totalorder %s5111_s25, 0  ;;  %s5132_s2 = smov 4  }
  0xe9   : > { %p5133_p13 = scmp.ne.s32.totalorder %s5109_s22, 0 }
  0xea   : > { %3587 = dma.hbm_to_vmem [thread:$0]  (!%p5131_p9), %s4498_s16, 2048, %s4524_s14, %s4356_s18, %s5123_s4, %s5123_s4, %s5132_s2  }
  0xeb   : > { %739 = sbr.rel (%p5133_p13) target bundleno = 4754 (0x1292), region = 92  ;;  %p5134_p10 = scmp.eq.s32.totalorder (!%p5133_p13), %s4270_s1, 0 }
  0xf2   : > { %4087 = dma.done.wait (%p5134_p10), [#allocation4], 512   ;;  %p5135_p6 = pmov %p5134_p10 }
  0xf4   : > { %4089 = vsyncadd (%p5135_p6), [#allocation4], 4294966784  ;;  %p5136_p0 = pmov %p5135_p6 }
  0xf6   : > { %4091 = dma.done.wait (%p5136_p0), [#allocation7], 256   ;;  %p5137_p8 = pmov %p5136_p0 }
  0xf7   : > { %s749_s25 = sand.u32 1, %s4270_s1   ;;  %s751_s18 = sand.u32 1, %s4108_s28  }
  0xf8   : > { %4093 = vsyncadd (%p5137_p8), [#allocation7], 4294967040  ;;  %s3220_s8 = sshll.u32 %s751_s18, 7  ;;  %s750_s22 = scalar_lea.sflag [#allocation4], %s749_s25 }
  0xf9   : > { %s4563_s4 = scalar_lea.vmem [#allocation8], %s3220_s8  ;;  %p5138_p3 = scmp.ne.s32.totalorder %s5108_s21, 0 }
  0xfb   : > { %4095 = dma.done.wait (%p5138_p3), %s750_s22, 8192  }
  0xfc   : > { %4097 = vsyncadd (%p5138_p3), %s750_s22, 4294959104  ;;  %s3221_s16 = sshll.u32 %s751_s18, 6  ;;  %p887_p1 = scmp.lt.s32.totalorder %s4116_s30, 1 }
  0xfd   : > { %s5139_s3 = sld [smem:[#allocation26_spill]]  ;;  %s5142_s18 = sld [smem:[#allocation31_spill]] }
  0xfe   : > { %s4571_s11 = scalar_select %p887_p1, %s4116_s30, 1 }
  0xff   : > { %s5143_s19 = sld [smem:[#allocation33_spill]]  ;;  %s5145_s20 = sld [smem:[#allocation36_spill]] }
 0x100   : > { %s3225_s6 = sshll.u32 %s4571_s11, 1  ;;  %s5146_s26 = sld [smem:[#allocation37_spill]] }
 0x101   : > { %s4612_s9 = scalar_lea.vmem [#allocation9], %s3221_s16  ;;  %s4614_s2 = scalar_lea.vmem [#allocation10], %s3221_s16 }
 0x102   : > { %s4616_s25 = scalar_lea.vmem [#allocation11], %s3220_s8  ;;  %s4618_s12 = scalar_lea.vmem [#allocation12], %s3220_s8 }
 0x103   : > { %s4581_s24 = scalar_lea.vmem %s5139_s3, %s3225_s6  ;;  %s902_s22 = scalar_lea.vmem %s5142_s18, %s4571_s11 }
 0x104   : > { %s5144_s3 = sld [smem:[#allocation35_spill]]  ;;  %p3227_p5 = scmp.ne.s32.totalorder %s4116_s30, 0 }
 0x105   : > { %s4598_s21 = scalar_lea.vmem %s5143_s19, %s3225_s6  ;;  %s912_s17 = scalar_lea.vmem %s5145_s20, %s4571_s11  ;;  %v922_v0 = vld [vmem:[#allocation3] sm:$0xff] (!%p3227_p5)  ;;  %v923_v1 = vld [vmem:[#allocation3 + $0x8] sm:$0xff] (!%p3227_p5)  ;;  %v924_v2 = vld [vmem:[#allocation3 + $0x10] sm:$0xff] (!%p3227_p5) }
 0x106   : > { %s915_s23 = scalar_lea.vmem %s5146_s26, %s4571_s11  ;;  %921 = sbr.rel (%p3227_p5) target bundleno = 269 (0x10d), region = 124  ;;  %926 = vst [vmem:[#allocation2] sm:$0xff] (!%p3227_p5), %v922_v0  ;;  %927 = vst [vmem:[#allocation2 + $0x8] sm:$0xff] (!%p3227_p5), %v923_v1  ;;  %v925_v3 = vld [vmem:[#allocation3 + $0x18] sm:$0xff] (!%p3227_p5) }
 0x107   : > { %928 = vst [vmem:[#allocation2 + $0x10] sm:$0xff] (!%p3227_p5), %v924_v2  ;;  %929 = vst [vmem:[#allocation2 + $0x18] sm:$0xff] (!%p3227_p5), %v925_v3 }
 0x10a   : > { %s909_s15 = scalar_lea.vmem %s5144_s3, %s4571_s11 }
 0x10d PF: > { %v3658_v4 = vld [vmem:[%s4563_s4 + $0x4] ss:$8 sps:$4 sm:$0xff]   ;;  %v3660_v5 = vld [vmem:[%s4563_s4] ss:$8 sps:$4 sm:$0xff]   ;;  %v4137_v6 = vmov 0   ;;  %v4636_v19 = vld [vmem:[#allocation2] sm:$0xff]  ;;  %v960_v34 = vlaneseq  ;;  %s5147_s8 = scalar_lea.vmem %s5045_s5, %s4571_s11 }
 0x10e   : > { %1082 = vmatprep.mubr.bf16.mxu0 %v4137_v6  ;;  %1050 = vmatprep.subr.bf16.mxu0 %v3658_v4  ;;  %v3661_v7 = vld [vmem:[%s4563_s4 + $0x14] ss:$8 sps:$4 sm:$0xff]   ;;  %v3663_v8 = vld [vmem:[%s4563_s4 + $0x10] ss:$8 sps:$4 sm:$0xff]   ;;  %v3664_v9 = vld [vmem:[%s4563_s4 + $0x24] ss:$8 sps:$4 sm:$0xff]  }
 0x10f   : > { %1051 = vmatpush1.bf16.msra.mxu0 %v3660_v5  ;;  %v3666_v10 = vld [vmem:[%s4563_s4 + $0x20] ss:$8 sps:$4 sm:$0xff]   ;;  %v3667_v11 = vld [vmem:[%s4563_s4 + $0x34] ss:$8 sps:$4 sm:$0xff]   ;;  %v3669_v12 = vld [vmem:[%s4563_s4 + $0x30] ss:$8 sps:$4 sm:$0xff]  }
 0x110   : > { %1052 = vmatprep.subr.bf16.mxu0 %v3661_v7  ;;  %v3670_v13 = vld [vmem:[%s4563_s4 + $0x44] ss:$8 sps:$4 sm:$0xff]   ;;  %v3672_v14 = vld [vmem:[%s4563_s4 + $0x40] ss:$8 sps:$4 sm:$0xff]   ;;  %v3673_v15 = vld [vmem:[%s4563_s4 + $0x54] ss:$8 sps:$4 sm:$0xff]  }
 0x111   : > { %v3675_v16 = vld [vmem:[%s4563_s4 + $0x50] ss:$8 sps:$4 sm:$0xff]   ;;  %v3676_v17 = vld [vmem:[%s4563_s4 + $0x64] ss:$8 sps:$4 sm:$0xff]   ;;  %v3678_v18 = vld [vmem:[%s4563_s4 + $0x60] ss:$8 sps:$4 sm:$0xff]  }
 0x112   : > { %v4638_v20 = vld [vmem:[#allocation2 + $0x8] sm:$0xff]  ;;  %v934_v21 = vld [vmem:[#allocation6] sm:$0xff]  ;;  %v4644_v27 = vld [vmem:[#allocation2 + $0x10] sm:$0xff]  ;;  %v4138_v33 = vmov 0.0   ;;  %vm4139_vm0 = vmmov 0   ;;  %v4654_v35 = vshrl.u32 %v960_v34, 7 }
 0x113   : > { %1053 = vmatpush1.bf16.msra.mxu0 %v3663_v8  ;;  %v935_v22 = vld [vmem:[#allocation6 + $0x8] sm:$0xff]  ;;  %v936_v25 = vadd.f32 %v934_v21, %v4636_v19  ;;  %v4646_v28 = vld [vmem:[#allocation2 + $0x18] sm:$0xff]  ;;  %v938_v30 = vadd.f32 %v934_v21, %v4644_v27  ;;  %v958_v37 = vld [vmem:[%s4581_s24] sm:$0x3]  ;;  %vm1231_vm1 = vcmask 261120   ;;  %v1103_v1 = vpack.c.bf16 %v4638_v20, %v4636_v19  ;;  %s4141_s16 = smov 64  }
 0x114   : > { %1054 = vmatprep.subr.bf16.mxu0 %v3664_v9  ;;  %v3679_v23 = vld [vmem:[%s4563_s4 + $0x74] ss:$8 sps:$4 sm:$0xff]   ;;  %v3681_v24 = vld [vmem:[%s4563_s4 + $0x70] ss:$8 sps:$4 sm:$0xff]   ;;  %v937_v26 = vadd.f32 %v935_v22, %v4638_v20  ;;  %v939_v31 = vadd.f32 %v935_v22, %v4646_v28  ;;  %v962_v36 = vsub.s32 0, %v4654_v35  ;;  %v966_v38 = vsub.s32 1, %v4654_v35 }
 0x115   : > { %v3682_v63 = vld [vmem:[%s4612_s9] sm:$0xff]   ;;  %v3683_v0 = vld [vmem:[%s4612_s9 + $0x8] sm:$0xff]   ;;  %3423 = vmatprep.mubr.bf16.mxu1 %v1103_v1  ;;  %v3684_v2 = vld [vmem:[%s4612_s9 + $0x10] sm:$0xff]   ;;  %v1104_v9 = vpack.c.bf16 %v4646_v28, %v4644_v27  ;;  %vm1326_vm2 = vcmask 130048   ;;  %s4140_s4 = smov 96   ;;  %s4142_s6 = smov 32  }
 0x116   : > { %v940_v29 = vpack.c.bf16 %v937_v26, %v936_v25  ;;  %v941_v32 = vpack.c.bf16 %v939_v31, %v938_v30  ;;  %v963_v39 = vrot.slane %v958_v37, %v962_v36  ;;  %v967_v41 = vrot.slane %v958_v37, %v966_v38  ;;  %3407 = vmatprep.subr.bf16.mxu1 %v3682_v63  ;;  %v3685_v3 = vld [vmem:[%s4612_s9 + $0x18] sm:$0xff]   ;;  %v3686_v4 = vld [vmem:[%s4612_s9 + $0x20] sm:$0xff]   ;;  %v3687_v5 = vld [vmem:[%s4612_s9 + $0x28] sm:$0xff]   ;;  %s5150_s14 = sld [smem:[#allocation30_spill]]  ;;  %p3315_p11 = scmp.ne.s32.totalorder %s4116_s30, 1 }
 0x117   : > { %1055 = vmatpush1.bf16.msra.mxu0 %v3666_v10  ;;  %3408 = vmatpush3.bf16.msra.mxu1 %v3682_v63  ;;  %v3688_v7 = vld [vmem:[%s4612_s9 + $0x30] sm:$0xff]   ;;  %v3689_v8 = vld [vmem:[%s4612_s9 + $0x38] sm:$0xff]   ;;  %vm2225_vm3 = vcmask 523264   ;;  %vm2230_vm4 = vcmask 785408   ;;  %s5148_s9 = sld [smem:[#allocation29_spill]] }
 0x118   : > { %1056 = vmatprep.subr.bf16.mxu0 %v3667_v11  ;;  %3409 = vmatprep.subr.bf16.mxu1 %v3683_v0 }
 0x11b   : > { %1057 = vmatpush1.bf16.msra.mxu0 %v3669_v12  ;;  %3410 = vmatpush3.bf16.msra.mxu1 %v3683_v0 }
 0x11c   : > { %1058 = vmatprep.subr.bf16.mxu0 %v3670_v13  ;;  %3411 = vmatprep.subr.bf16.mxu1 %v3684_v2  ;;  %s5151_s7 = scalar_lea.vmem %s5150_s14, %s4571_s11 }
 0x11d   : > { %s5149_s18 = scalar_lea.vmem %s5148_s9, %s4571_s11 }
 0x11f   : > { %1059 = vmatpush1.bf16.msra.mxu0 %v3672_v14  ;;  %3412 = vmatpush3.bf16.msra.mxu1 %v3684_v2 }
 0x120   : > { %1060 = vmatprep.subr.bf16.mxu0 %v3673_v15  ;;  %3413 = vmatprep.subr.bf16.mxu1 %v3685_v3 }
 0x123   : > { %1061 = vmatpush1.bf16.msra.mxu0 %v3675_v16  ;;  %3414 = vmatpush3.bf16.msra.mxu1 %v3685_v3 }
 0x124   : > { %1062 = vmatprep.subr.bf16.mxu0 %v3676_v17  ;;  %3415 = vmatprep.subr.bf16.mxu1 %v3686_v4 }
 0x127   : > { %1063 = vmatpush1.bf16.msra.mxu0 %v3678_v18  ;;  %3416 = vmatpush3.bf16.msra.mxu1 %v3686_v4 }
 0x128   : > { %1064 = vmatprep.subr.bf16.mxu0 %v3679_v23  ;;  %3417 = vmatprep.subr.bf16.mxu1 %v3687_v5 }
 0x12b   : > { %1065 = vmatpush1.bf16.msra.mxu0 %v3681_v24  ;;  %3418 = vmatpush3.bf16.msra.mxu1 %v3687_v5 }
 0x12c   : > { %3427 = vmatprep.subr.bf16.mxu0 %v4138_v33  ;;  %3419 = vmatprep.subr.bf16.mxu1 %v3688_v7 }
 0x12e   : > { %1083 = vmatmul.mubr.bf16.vlgmr.msra.gmra.mrb[0].mxu0 %v940_v29 }
 0x12f   : > { %1092 = vmatprep.mubr.bf16.mxu0 %v4137_v6  ;;  %3420 = vmatpush3.bf16.msra.mxu1 %v3688_v7 }
 0x130   : > { %3421 = vmatprep.subr.bf16.mxu1 %v3689_v8 }
 0x133   : > { %3422 = vmatpush3.bf16.msra.mxu1 %v3689_v8 }
 0x134   : > { %3439 = vmatprep.subr.bf16.mxu1 %v4138_v33 }
 0x136   : > { %1093 = vmatmul.mubr.bf16.gmra.mrb[4].mxu0 %v941_v32  ;;  %3424 = vmatmul.mubr.bf16.vlgmr.msra.gmra.mrb[0].mxu1 %v1104_v9 }
 0x137   : > { %3429 = vmatprep.mubr.msk.bf16.mxu0 %vm4139_vm0, %v4138_v33  ;;  %3441 = vmatprep.mubr.msk.bf16.mxu1 %vm4139_vm0, %v4138_v33 }
 0x201   : > { %v1084_v40 = vpop.f32.mrb[0].mxu0 }
 0x202   : > { %v1086_v42 = vpop.f32.mrb[1].mxu0  ;;  %v1085_v44 = vadd.f32 %v1084_v40, %v963_v39 }
 0x203   : > { %v1088_v43 = vpop.f32.mrb[2].mxu0  ;;  %v1087_v47 = vadd.f32 %v1086_v42, %v967_v41 }
 0x204   : > { %v1089_v45 = vadd.f32 %v1088_v43, %v963_v39  ;;  %v1090_v46 = vpop.f32.mrb[3].mxu0 }
 0x205   : > { %v1091_v48 = vadd.f32 %v1090_v46, %v967_v41 }
 0x206   : > { %v4663_v49 = vpack.c.bf16 %v1089_v45, %v1085_v44  ;;  %v3244_v44 = vld [vmem:[%s5147_s8] ss:$0 sm:$0xff] }
 0x207   : > { %v4665_v50 = vpack.c.bf16 %v1091_v48, %v1087_v47 }
 0x209   : > { %v1094_v51 = vpop.f32.mrb[4].mxu0  ;;  %v1236_v52 = vsel %vm1231_vm1, %v4665_v50, 0 }
 0x20a   : > { %v1095_v53 = vadd.f32 %v1094_v51, %v963_v39  ;;  %v1096_v54 = vpop.f32.mrb[5].mxu0  ;;  %3428 = vmatpush3.bf16.xpose.msra.mxu0 %v1236_v52 }
 0x20b   : > { %v1097_v55 = vadd.f32 %v1096_v54, %v967_v41  ;;  %v1098_v56 = vpop.f32.mrb[6].mxu0  ;;  %3433 = vmatprep.subr.bf16.mxu0 %v4138_v33 }
 0x20c   : > { %v1099_v57 = vadd.f32 %v1098_v56, %v963_v39  ;;  %v1100_v58 = vpop.f32.mrb[7].mxu0 }
 0x20d   : > { %v1101_v59 = vadd.f32 %v1100_v58, %v967_v41  ;;  %v3425_v41 = vpop.f32.mrb[0].mxu1 }
 0x20e   : > { %v4670_v60 = vpack.c.bf16 %v1099_v57, %v1095_v53  ;;  %v1210_v42 = vpop.f32.mrb[1].mxu1  ;;  %v1219_v51 = vadd.f32 %v3425_v41, %v3244_v44 }
 0x20f   : > { %v4672_v61 = vpack.c.bf16 %v1101_v59, %v1097_v55  ;;  %v3426_v43 = vpop.f32.mrb[2].mxu1  ;;  %v1211_v46 = vadd.f32 %v3244_v44, %v1210_v42 }
 0x210   : > { %v1213_v45 = vpop.f32.mrb[3].mxu1  ;;  %v1222_v52 = vadd.f32 %v3426_v43, %v3244_v44 }
 0x211   : > { %3430 = vmatmul.mubr.msk.bf16.vlgmr.msra.gmra.mrb[8].mxu0 %vm1231_vm1, %v4663_v49  ;;  %v1283_v62 = vsel %vm1231_vm1, %v4672_v61, 0  ;;  %v1214_v47 = vadd.f32 %v3244_v44, %v1213_v45 }
 0x212   : > { %3434 = vmatpush3.bf16.xpose.msra.mxu0 %v1283_v62  ;;  %3435 = vmatprep.mubr.msk.bf16.mxu0 %vm4139_vm0, %v4138_v33  ;;  %v4720_v53 = vpack.c.bf16 %v1222_v52, %v1219_v51 }
 0x213   : > { %3445 = vmatprep.subr.bf16.mxu0 %v4138_v33  ;;  %v4714_v48 = vpack.c.bf16 %v1214_v47, %v1211_v46 }
 0x215   : > { %3440 = vmatpush3.bf16.msra.mxu1 %v4714_v48 }
 0x216   : > { %3451 = vmatprep.subr.bf16.mxu1 %v4138_v33 }
 0x219   : > { %3436 = vmatmul.mubr.msk.bf16.vlgmr.msra.gmra.mrb[12].mxu0 %vm1231_vm1, %v4670_v60 }
 0x21a   : > { %3447 = vmatprep.mubr.msk.bf16.mxu0 %vm4139_vm0, %v4138_v33  ;;  %3446 = vmatpush3.bf16.msra.mxu0 %v4720_v53 }
 0x21b   : > { %3457 = vmatprep.subr.bf16.mxu0 %v4138_v33 }
 0x2e4   : > { %v1272_v10 = vpop.f32.mrb[8].mxu0 }
 0x2e5   : > { %v3431_v11 = vpop.f32.mrb[9].mxu0  ;;  %v1327_v12 = vsel %vm1326_vm2, %v1272_v10, -inf }
 0x2e6   : > { %1328 = vmax.xlane.f32.xlu0 %v1327_v12  ;;  %v1275_v13 = vpop.f32.mrb[10].mxu0 }
 0x2e7   : > { %v3432_v14 = vpop.f32.mrb[11].mxu0  ;;  %v1330_v15 = vsel %vm1326_vm2, %v1275_v13, -inf }
 0x2ea   : > { %1331 = vmax.xlane.f32.xlu0 %v1330_v15 }
 0x2ec   : > { %v1319_v16 = vpop.f32.mrb[12].mxu0 }
 0x2ed   : > { %v1333_v17 = vsel %vm1326_vm2, %v1319_v16, -inf  ;;  %v3437_v18 = vpop.f32.mrb[13].mxu0 }
 0x2ee   : > { %1334 = vmax.xlane.f32.xlu1 %v1333_v17  ;;  %v1322_v19 = vpop.f32.mrb[14].mxu0 }
 0x2ef   : > { %v1336_v20 = vsel %vm1326_vm2, %v1322_v19, -inf  ;;  %v3438_v21 = vpop.f32.mrb[15].mxu0 }
 0x2f2   : > { %1337 = vmax.xlane.f32.xlu1 %v1336_v20 }
 0x373   : > { %v1329_v22 = vpop.xlane.xlu0 %1328 }
 0x374   : > { %v1339_v23 = vsub.f32 %v1272_v10, %v1329_v22 }
 0x376   : > { %v1343_v24 = vmul.f32 1.442695, %v1339_v23 }
 0x377   : > { %v1332_v25 = vpop.xlane.xlu0 %1331 }
 0x378   : > { %3738 = vpow2.f32 %v1343_v24  ;;  %v1340_v26 = vsub.f32 %v1275_v13, %v1332_v25 }
 0x37a   : > { %v1345_v27 = vmul.f32 1.442695, %v1340_v26 }
 0x37b   : > { %v1335_v28 = vpop.xlane.xlu1 %1334 }
 0x37c   : > { %3740 = vpow2.f32 %v1345_v27  ;;  %v1341_v29 = vsub.f32 %v1319_v16, %v1335_v28 }
 0x37e   : > { %v1347_v30 = vmul.f32 1.442695, %v1341_v29 }
 0x37f   : > { %v1338_v54 = vpop.xlane.xlu1 %1337 }
 0x380   : > { %3742 = vpow2.f32 %v1347_v30  ;;  %v1342_v55 = vsub.f32 %v1322_v19, %v1338_v54 }
 0x382   : > { %v3739_v31 = vpop.eup %3738  ;;  %v1349_v56 = vmul.f32 1.442695, %v1342_v55 }
 0x383   : > { %v1351_v32 = vsel %vm1326_vm2, %v3739_v31, 0.0 }
 0x384   : > { %1352 = vadd.xlane.f32.xlu0 %v1351_v32  ;;  %3744 = vpow2.f32 %v1349_v56 }
 0x386   : > { %v3741_v34 = vpop.eup %3740 }
 0x387   : > { %v1354_v37 = vsel %vm1326_vm2, %v3741_v34, 0.0 }
 0x388   : > { %1355 = vadd.xlane.f32.xlu1 %v1354_v37 }
 0x38a   : > { %v3743_v39 = vpop.eup %3742 }
 0x38b   : > { %v1357_v40 = vsel %vm1326_vm2, %v3743_v39, 0.0 }
 0x38c   : > { %1358 = vadd.xlane.f32.xlu0 %v1357_v40 }
 0x38e   : > { %v3745_v57 = vpop.eup %3744 }
 0x38f   : > { %v1360_v58 = vsel %vm1326_vm2, %v3745_v57, 0.0 }
 0x399   : > { %1520 = vrot.lane.b32.xlu1 %v4672_v61, %s4140_s4 }
 0x3a2   : > { %1467 = vrot.lane.b32.xlu0 %v4665_v50, %s4140_s4 }
 0x3bd   : > { %1361 = vadd.xlane.f32.xlu1 %v1360_v58 }
 0x3ce   : > { %1464 = vrot.lane.b32.xlu1 %v4663_v49, %s4140_s4 }
 0x3d2   : > { %1517 = vrot.lane.b32.xlu1 %v4670_v60, %s4140_s4 }
 0x411   : > { %v1353_v59 = vpop.xlane.xlu0 %1352 }
 0x412   : > { %3746 = vrcp.f32 %v1353_v59 }
 0x415   : > { %v1356_v62 = vpop.xlane.xlu1 %1355 }
 0x416   : > { %3748 = vrcp.f32 %v1356_v62 }
 0x419   : > { %v1359_v63 = vpop.xlane.xlu0 %1358  ;;  %v1521_v8 = vpop.permute.xlu1 %1520 }
 0x41a   : > { %3750 = vrcp.f32 %v1359_v63  ;;  %v1526_v16 = vsel %vm1231_vm1, %v1521_v8, 0 }
 0x41c   : > { %v3747_v0 = vpop.eup %3746 }
 0x41d   : > { %v1364_v2 = vmul.f32 %v3747_v0, %v3739_v31  ;;  %v1468_v4 = vpop.permute.xlu0 %1467 }
 0x41e   : > { %v1473_v7 = vsel %vm1231_vm1, %v1468_v4, 0 }
 0x420   : > { %v3749_v1 = vpop.eup %3748 }
 0x421   : > { %v1366_v3 = vmul.f32 %v3749_v1, %v3741_v34 }
 0x423   : > { %v1371_v5 = vpack.c.bf16 %v1366_v3, %v1364_v2 }
 0x424   : > { %v3751_v11 = vpop.eup %3750 }
 0x425   : > { %3442 = vmatmul.mubr.msk.bf16.vlgmr.msra.gmra.mrb[4].mxu1 %vm1326_vm2, %v1371_v5  ;;  %v1368_v13 = vmul.f32 %v3751_v11, %v3743_v39 }
 0x426   : > { %3452 = vmatpush3.bf16.xpose.msra.mxu1 %v1473_v7  ;;  %3453 = vmatprep.mubr.msk.bf16.mxu1 %vm4139_vm0, %v4138_v33 }
 0x427   : > { %3463 = vmatprep.subr.bf16.mxu1 %v4138_v33 }
 0x44a   : > { %v1362_v9 = vpop.xlane.xlu1 %1361 }
 0x44b   : > { %3752 = vrcp.f32 %v1362_v9 }
 0x44e   : > { %v1465_v10 = vpop.permute.xlu1 %1464 }
 0x44f   : > { %3454 = vmatmul.mubr.msk.bf16.vlgmr.msra.gmra.mrb[8].mxu1 %vm1231_vm1, %v1465_v10 }
 0x450   : > { %3465 = vmatprep.mubr.msk.bf16.mxu1 %vm4139_vm0, %v4138_v33 }
 0x452   : > { %v1518_v17 = vpop.permute.xlu1 %1517 }
 0x455   : > { %v3753_v12 = vpop.eup %3752 }
 0x456   : > { %v1370_v14 = vmul.f32 %v3753_v12, %v3745_v57 }
 0x458   : > { %v1372_v15 = vpack.c.bf16 %v1370_v14, %v1368_v13 }
 0x45a   : > { %3448 = vmatmul.mubr.msk.bf16.vlgmr.msra.gmra.mrb[16].mxu0 %vm1326_vm2, %v1372_v15 }
 0x45b   : > { %3458 = vmatpush3.bf16.xpose.msra.mxu0 %v1526_v16  ;;  %3459 = vmatprep.mubr.msk.bf16.mxu0 %vm4139_vm0, %v4138_v33 }
 0x45c   : > { %3469 = vmatprep.subr.bf16.mxu0 %v4138_v33 }
 0x462   : > { %3460 = vmatmul.mubr.msk.bf16.vlgmr.msra.gmra.mrb[20].mxu0 %vm1231_vm1, %v1518_v17 }
 0x463   : > { %3471 = vmatprep.mubr.msk.bf16.mxu0 %vm4139_vm0, %v4138_v33 }
 0x4f8   : > { %v4745_v18 = vpop.f32.mrb[4].mxu1 }
 0x4f9   : > { %v3443_v19 = vpop.f32.mrb[5].mxu1 }
 0x4fa   : > { %v4747_v20 = vpop.f32.mrb[6].mxu1 }
 0x4fb   : > { %v1461_v21 = vpack.c.bf16 %v4747_v20, %v4745_v18  ;;  %v3444_v22 = vpop.f32.mrb[7].mxu1  ;;  %v3269_v18 = vld [vmem:[%s5149_s18] ss:$0 sm:$0xff] }
 0x522   : > { %v1509_v23 = vpop.f32.mrb[8].mxu1 }
 0x523   : > { %v3455_v24 = vpop.f32.mrb[9].mxu1  ;;  %v1569_v25 = vsel %vm1326_vm2, %v1509_v23, -inf }
 0x524   : > { %1570 = vmax.xlane.f32.xlu0 %v1569_v25  ;;  %v1512_v26 = vpop.f32.mrb[10].mxu1 }
 0x525   : > { %v3456_v27 = vpop.f32.mrb[11].mxu1  ;;  %v1572_v28 = vsel %vm1326_vm2, %v1512_v26, -inf }
 0x526   : > { %1573 = vmax.xlane.f32.xlu1 %v1572_v28 }
 0x52d   : > { %v4753_v29 = vpop.f32.mrb[16].mxu0 }
 0x52e   : > { %v3449_v30 = vpop.f32.mrb[17].mxu0 }
 0x52f   : > { %v4755_v31 = vpop.f32.mrb[18].mxu0 }
 0x530   : > { %v1462_v32 = vpack.c.bf16 %v4755_v31, %v4753_v29  ;;  %v3450_v34 = vpop.f32.mrb[19].mxu0  ;;  %v3818_v31 = vld [vmem:[#allocation2] sm:$0xff] }
 0x535   : > { %v1562_v37 = vpop.f32.mrb[20].mxu0 }
 0x536   : > { %v3461_v39 = vpop.f32.mrb[21].mxu0  ;;  %v1575_v40 = vsel %vm1326_vm2, %v1562_v37, -inf }
 0x537   : > { %1576 = vmax.xlane.f32.xlu0 %v1575_v40  ;;  %v1565_v41 = vpop.f32.mrb[22].mxu0 }
 0x538   : > { %v3462_v42 = vpop.f32.mrb[23].mxu0  ;;  %v1578_v43 = vsel %vm1326_vm2, %v1565_v41, -inf }
 0x53b   : > { %1579 = vmax.xlane.f32.xlu0 %v1578_v43 }
 0x5b1   : > { %v1571_v44 = vpop.xlane.xlu0 %1570 }
 0x5b2   : > { %v1581_v45 = vsub.f32 %v1509_v23, %v1571_v44 }
 0x5b3   : > { %v1574_v46 = vpop.xlane.xlu1 %1573 }
 0x5b4   : > { %v1585_v47 = vmul.f32 1.442695, %v1581_v45  ;;  %v1582_v51 = vsub.f32 %v1512_v26, %v1574_v46 }
 0x5b6   : > { %3754 = vpow2.f32 %v1585_v47  ;;  %v1587_v52 = vmul.f32 1.442695, %v1582_v51 }
 0x5b8   : > { %3756 = vpow2.f32 %v1587_v52 }
 0x5c0   : > { %v3755_v54 = vpop.eup %3754 }
 0x5c1   : > { %v1593_v55 = vsel %vm1326_vm2, %v3755_v54, 0.0 }
 0x5c2   : > { %v3757_v56 = vpop.eup %3756  ;;  %1594 = vadd.xlane.f32.xlu0 %v1593_v55 }
 0x5c3   : > { %v1596_v57 = vsel %vm1326_vm2, %v3757_v56, 0.0 }
 0x5c4   : > { %1597 = vadd.xlane.f32.xlu1 %v1596_v57  ;;  %v1577_v58 = vpop.xlane.xlu0 %1576 }
 0x5c5   : > { %v1583_v59 = vsub.f32 %v1562_v37, %v1577_v58 }
 0x5c7   : > { %v1589_v62 = vmul.f32 1.442695, %v1583_v59 }
 0x5c8   : > { %v1580_v1 = vpop.xlane.xlu0 %1579 }
 0x5c9   : > { %3758 = vpow2.f32 %v1589_v62  ;;  %v1584_v2 = vsub.f32 %v1565_v41, %v1580_v1 }
 0x5cb   : > { %v1591_v3 = vmul.f32 1.442695, %v1584_v2 }
 0x5cd   : > { %3760 = vpow2.f32 %v1591_v3 }
 0x5d3   : > { %v3759_v63 = vpop.eup %3758 }
 0x5d4   : > { %v1599_v0 = vsel %vm1326_vm2, %v3759_v63, 0.0 }
 0x5d5   : > { %1664 = vrot.lane.b32.xlu1 %v4720_v53, %s4140_s4  ;;  %1600 = vadd.xlane.f32.xlu0 %v1599_v0 }
 0x5d7   : > { %v3761_v4 = vpop.eup %3760 }
 0x5d8   : > { %v1602_v5 = vsel %vm1326_vm2, %v3761_v4, 0.0 }
 0x5d9   : > { %1715 = vrot.lane.b32.xlu1 %v4665_v50, %s4141_s16 }
 0x5eb   : > { %1616 = vrot.lane.b32.xlu0 %v4714_v48, %s4140_s4 }
 0x5ef   : > { %1713 = vrot.lane.b32.xlu0 %v4663_v49, %s4141_s16 }
 0x5fd   : > { %1603 = vadd.xlane.f32.xlu1 %v1602_v5 }
 0x60e   : > { %1766 = vrot.lane.b32.xlu1 %v4672_v61, %s4141_s16 }
 0x612   : > { %1764 = vrot.lane.b32.xlu1 %v4670_v60, %s4141_s16 }
 0x64f   : > { %v1595_v9 = vpop.xlane.xlu0 %1594 }
 0x651   : > { %v1598_v7 = vpop.xlane.xlu1 %1597 }
 0x652   : > { %3762 = vrcp.f32 %v1598_v7 }
 0x653   : > { %3764 = vrcp.f32 %v1595_v9 }
 0x655   : > { %v1665_v8 = vpop.permute.xlu1 %1664 }
 0x656   : > { %3470 = vmatpush3.bf16.msra.mxu0 %v1665_v8 }
 0x657   : > { %3481 = vmatprep.subr.bf16.mxu0 %v4138_v33 }
 0x659   : > { %v1716_v17 = vpop.permute.xlu1 %1715 }
 0x65a   : > { %v1721_v19 = vsel %vm1231_vm1, %v1716_v17, 0 }
 0x65c   : > { %v3763_v10 = vpop.eup %3762 }
 0x65d   : > { %v3765_v12 = vpop.eup %3764  ;;  %v1608_v13 = vmul.f32 %v3763_v10, %v3757_v56 }
 0x65e   : > { %v1606_v14 = vmul.f32 %v3765_v12, %v3755_v54 }
 0x660   : > { %v1613_v16 = vpack.c.bf16 %v1608_v13, %v1606_v14 }
 0x662   : > { %v1601_v11 = vpop.xlane.xlu0 %1600 }
 0x663   : > { %3766 = vrcp.f32 %v1601_v11 }
 0x666   : > { %v1617_v15 = vpop.permute.xlu0 %1616 }
 0x667   : > { %3464 = vmatpush3.bf16.msra.mxu1 %v1617_v15 }
 0x668   : > { %3475 = vmatprep.subr.bf16.mxu1 %v4138_v33 }
 0x66a   : > { %3466 = vmatmul.mubr.msk.bf16.vlgmr.msra.gmra.mrb[12].mxu1 %vm1326_vm2, %v1613_v16  ;;  %v1714_v22 = vpop.permute.xlu0 %1713 }
 0x66b   : > { %3477 = vmatprep.mubr.msk.bf16.mxu1 %vm4139_vm0, %v4138_v33 }
 0x66d   : > { %v3767_v24 = vpop.eup %3766 }
 0x66e   : > { %v1610_v26 = vmul.f32 %v3767_v24, %v3759_v63 }
 0x670   : > { %3476 = vmatpush3.bf16.xpose.msra.mxu1 %v1721_v19 }
 0x671   : > { %3487 = vmatprep.subr.bf16.mxu1 %v4138_v33 }
 0x677   : > { %3478 = vmatmul.mubr.msk.bf16.vlgmr.msra.gmra.mrb[16].mxu1 %vm1231_vm1, %v1714_v22 }
 0x678   : > { %3489 = vmatprep.mubr.msk.bf16.mxu1 %vm4139_vm0, %v4138_v33 }
 0x68a   : > { %v1604_v23 = vpop.xlane.xlu1 %1603 }
 0x68b   : > { %3768 = vrcp.f32 %v1604_v23 }
 0x68e   : > { %v1767_v28 = vpop.permute.xlu1 %1766 }
 0x68f   : > { %v1772_v34 = vsel %vm1231_vm1, %v1767_v28, 0 }
 0x692   : > { %v1765_v37 = vpop.permute.xlu1 %1764 }
 0x695   : > { %v3769_v25 = vpop.eup %3768 }
 0x696   : > { %v1612_v27 = vmul.f32 %v3769_v25, %v3761_v4 }
 0x698   : > { %v1614_v30 = vpack.c.bf16 %v1612_v27, %v1610_v26 }
 0x69a   : > { %3472 = vmatmul.mubr.msk.bf16.vlgmr.msra.gmra.mrb[24].mxu0 %vm1326_vm2, %v1614_v30 }
 0x69b   : > { %3482 = vmatpush3.bf16.xpose.msra.mxu0 %v1772_v34  ;;  %3483 = vmatprep.mubr.msk.bf16.mxu0 %vm4139_vm0, %v4138_v33 }
 0x69c   : > { %3493 = vmatprep.subr.bf16.mxu0 %v4138_v33 }
 0x6a2   : > { %3484 = vmatmul.mubr.msk.bf16.vlgmr.msra.gmra.mrb[28].mxu0 %vm1231_vm1, %v1765_v37 }
 0x6a3   : > { %3495 = vmatprep.mubr.msk.bf16.mxu0 %vm4139_vm0, %v4138_v33 }
 0x73d   : > { %v4795_v39 = vpop.f32.mrb[12].mxu1 }
 0x73e   : > { %v3467_v40 = vpop.f32.mrb[13].mxu1 }
 0x73f   : > { %v4797_v41 = vpop.f32.mrb[14].mxu1 }
 0x740   : > { %v1711_v42 = vpack.c.bf16 %v4797_v41, %v4795_v39  ;;  %v3468_v43 = vpop.f32.mrb[15].mxu1 }
 0x74a   : > { %v1757_v44 = vpop.f32.mrb[16].mxu1 }
 0x74b   : > { %v3479_v45 = vpop.f32.mrb[17].mxu1  ;;  %v1815_v46 = vsel %vm1326_vm2, %v1757_v44, -inf }
 0x74c   : > { %1816 = vmax.xlane.f32.xlu0 %v1815_v46  ;;  %v1760_v47 = vpop.f32.mrb[18].mxu1 }
 0x74d   : > { %v3480_v51 = vpop.f32.mrb[19].mxu1  ;;  %v1818_v52 = vsel %vm1326_vm2, %v1760_v47, -inf }
 0x74e   : > { %1819 = vmax.xlane.f32.xlu1 %v1818_v52 }
 0x76d   : > { %v4803_v54 = vpop.f32.mrb[24].mxu0 }
 0x76e   : > { %v3473_v55 = vpop.f32.mrb[25].mxu0 }
 0x76f   : > { %v4805_v56 = vpop.f32.mrb[26].mxu0 }
 0x770   : > { %v1712_v57 = vpack.c.bf16 %v4805_v56, %v4803_v54  ;;  %v3474_v58 = vpop.f32.mrb[27].mxu0 }
 0x775   : > { %v1808_v59 = vpop.f32.mrb[28].mxu0 }
 0x776   : > { %v3485_v62 = vpop.f32.mrb[29].mxu0  ;;  %v1821_v63 = vsel %vm1326_vm2, %v1808_v59, -inf }
 0x777   : > { %1822 = vmax.xlane.f32.xlu0 %v1821_v63  ;;  %v1811_v0 = vpop.f32.mrb[30].mxu0 }
 0x778   : > { %v3486_v1 = vpop.f32.mrb[31].mxu0  ;;  %v1824_v2 = vsel %vm1326_vm2, %v1811_v0, -inf }
 0x77b   : > { %1825 = vmax.xlane.f32.xlu0 %v1824_v2 }
 0x7d9   : > { %v1817_v3 = vpop.xlane.xlu0 %1816 }
 0x7da   : > { %v1827_v4 = vsub.f32 %v1757_v44, %v1817_v3 }
 0x7db   : > { %v1820_v5 = vpop.xlane.xlu1 %1819 }
 0x7dc   : > { %v1831_v7 = vmul.f32 1.442695, %v1827_v4  ;;  %v1828_v8 = vsub.f32 %v1760_v47, %v1820_v5 }
 0x7de   : > { %3770 = vpow2.f32 %v1831_v7  ;;  %v1833_v9 = vmul.f32 1.442695, %v1828_v8 }
 0x7e0   : > { %3772 = vpow2.f32 %v1833_v9 }
 0x7e8   : > { %v3771_v10 = vpop.eup %3770 }
 0x7e9   : > { %v1839_v11 = vsel %vm1326_vm2, %v3771_v10, 0.0 }
 0x7ea   : > { %v3773_v12 = vpop.eup %3772  ;;  %1840 = vadd.xlane.f32.xlu0 %v1839_v11 }
 0x7eb   : > { %v1842_v13 = vsel %vm1326_vm2, %v3773_v12, 0.0 }
 0x7ec   : > { %1843 = vadd.xlane.f32.xlu1 %v1842_v13 }
 0x7fd   : > { %1908 = vrot.lane.b32.xlu1 %v4720_v53, %s4141_s16 }
 0x801   : > { %1959 = vrot.lane.b32.xlu1 %v4665_v50, %s4142_s6 }
 0x804   : > { %v1823_v14 = vpop.xlane.xlu0 %1822 }
 0x805   : > { %v1829_v15 = vsub.f32 %v1808_v59, %v1823_v14 }
 0x807   : > { %v1835_v16 = vmul.f32 1.442695, %v1829_v15 }
 0x808   : > { %v1826_v17 = vpop.xlane.xlu0 %1825 }
 0x809   : > { %3774 = vpow2.f32 %v1835_v16  ;;  %v1830_v19 = vsub.f32 %v1811_v0, %v1826_v17 }
 0x80b   : > { %v1837_v23 = vmul.f32 1.442695, %v1830_v19 }
 0x80d   : > { %3776 = vpow2.f32 %v1837_v23 }
 0x813   : > { %v3775_v22 = vpop.eup %3774 }
 0x814   : > { %v1845_v24 = vsel %vm1326_vm2, %v3775_v22, 0.0 }
 0x815   : > { %1846 = vadd.xlane.f32.xlu0 %v1845_v24 }
 0x817   : > { %v3777_v25 = vpop.eup %3776 }
 0x818   : > { %v1848_v26 = vsel %vm1326_vm2, %v3777_v25, 0.0 }
 0x825   : > { %1849 = vadd.xlane.f32.xlu1 %v1848_v26 }
 0x82b   : > { %1861 = vrot.lane.b32.xlu0 %v4714_v48, %s4141_s16 }
 0x82f   : > { %1957 = vrot.lane.b32.xlu0 %v4663_v49, %s4142_s6 }
 0x836   : > { %2010 = vrot.lane.b32.xlu1 %v4672_v61, %s4142_s6 }
 0x83a   : > { %2008 = vrot.lane.b32.xlu1 %v4670_v60, %s4142_s6 }
 0x877   : > { %v1841_v28 = vpop.xlane.xlu0 %1840 }
 0x879   : > { %v1844_v50 = vpop.xlane.xlu1 %1843 }
 0x87a   : > { %3778 = vrcp.f32 %v1844_v50 }
 0x87b   : > { %3780 = vrcp.f32 %v1841_v28 }
 0x87d   : > { %v1909_v27 = vpop.permute.xlu1 %1908 }
 0x87e   : > { %3494 = vmatpush3.bf16.msra.mxu0 %v1909_v27 }
 0x87f   : > { %3505 = vmatprep.subr.bf16.mxu0 %v4138_v33 }
 0x881   : > { %v1960_v60 = vpop.permute.xlu1 %1959 }
 0x882   : > { %v1965_v61 = vsel %vm1231_vm1, %v1960_v60, 0 }
 0x884   : > { %v3779_v30 = vpop.eup %3778 }
 0x885   : > { %v3781_v37 = vpop.eup %3780  ;;  %v1854_v40 = vmul.f32 %v3779_v30, %v3773_v12 }
 0x886   : > { %v1852_v43 = vmul.f32 %v3781_v37, %v3771_v10 }
 0x888   : > { %v1859_v44 = vpack.c.bf16 %v1854_v40, %v1852_v43 }
 0x8a2   : > { %v1847_v34 = vpop.xlane.xlu0 %1846 }
 0x8a3   : > { %3782 = vrcp.f32 %v1847_v34 }
 0x8a6   : > { %v1862_v49 = vpop.permute.xlu0 %1861 }
 0x8a7   : > { %3488 = vmatpush3.bf16.msra.mxu1 %v1862_v49 }
 0x8a8   : > { %3499 = vmatprep.subr.bf16.mxu1 %v4138_v33 }
 0x8aa   : > { %3490 = vmatmul.mubr.msk.bf16.vlgmr.msra.gmra.mrb[20].mxu1 %vm1326_vm2, %v1859_v44  ;;  %v1958_v46 = vpop.permute.xlu0 %1957 }
 0x8ab   : > { %3501 = vmatprep.mubr.msk.bf16.mxu1 %vm4139_vm0, %v4138_v33 }
 0x8ad   : > { %v3783_v47 = vpop.eup %3782 }
 0x8ae   : > { %v1856_v52 = vmul.f32 %v3783_v47, %v3775_v22 }
 0x8b0   : > { %3500 = vmatpush3.bf16.xpose.msra.mxu1 %v1965_v61 }
 0x8b1   : > { %3511 = vmatprep.subr.bf16.mxu1 %v4138_v33 }
 0x8b2   : > { %v1850_v45 = vpop.xlane.xlu1 %1849 }
 0x8b3   : > { %3784 = vrcp.f32 %v1850_v45 }
 0x8b6   : > { %v2011_v58 = vpop.permute.xlu1 %2010 }
 0x8b7   : > { %3502 = vmatmul.mubr.msk.bf16.vlgmr.msra.gmra.mrb[24].mxu1 %vm1231_vm1, %v1958_v46  ;;  %v2016_v62 = vsel %vm1231_vm1, %v2011_v58, 0 }
 0x8b8   : > { %3513 = vmatprep.mubr.msk.bf16.mxu1 %vm4139_vm0, %v4138_v33 }
 0x8ba   : > { %v2009_v63 = vpop.permute.xlu1 %2008 }
 0x8bd   : > { %v3785_v51 = vpop.eup %3784 }
 0x8be   : > { %v1858_v55 = vmul.f32 %v3785_v51, %v3777_v25 }
 0x8c0   : > { %v1860_v59 = vpack.c.bf16 %v1858_v55, %v1856_v52 }
 0x8c2   : > { %3496 = vmatmul.mubr.msk.bf16.vlgmr.msra.gmra.mrb[32].mxu0 %vm1326_vm2, %v1860_v59 }
 0x8c3   : > { %3506 = vmatpush3.bf16.xpose.msra.mxu0 %v2016_v62  ;;  %3507 = vmatprep.mubr.msk.bf16.mxu0 %vm4139_vm0, %v4138_v33 }
 0x8c4   : > { %3517 = vmatprep.subr.bf16.mxu0 %v4138_v33 }
 0x8ca   : > { %3508 = vmatmul.mubr.msk.bf16.vlgmr.msra.gmra.mrb[36].mxu0 %vm1231_vm1, %v2009_v63 }
 0x8cb   : > { %3519 = vmatprep.mubr.msk.bf16.mxu0 %vm4139_vm0, %v4138_v33 }
 0x97d   : > { %v1901_v0 = vpop.f32.mrb[20].mxu1 }
 0x97e   : > { %v3491_v1 = vpop.f32.mrb[21].mxu1 }
 0x97f   : > { %v1904_v2 = vpop.f32.mrb[22].mxu1 }
 0x980   : > { %v1955_v3 = vpack.c.bf16 %v1904_v2, %v1901_v0  ;;  %v3492_v4 = vpop.f32.mrb[23].mxu1 }
 0x981   : > { %v3690_v4 = vld [vmem:[%s4614_s2] sm:$0xff]  }
 0x98a   : > { %v2001_v5 = vpop.f32.mrb[24].mxu1 }
 0x98b   : > { %v3503_v7 = vpop.f32.mrb[25].mxu1  ;;  %v2059_v8 = vsel %vm1326_vm2, %v2001_v5, -inf }
 0x98c   : > { %2060 = vmax.xlane.f32.xlu0 %v2059_v8  ;;  %v2004_v9 = vpop.f32.mrb[26].mxu1  ;;  %v3692_v7 = vld [vmem:[%s4614_s2 + $0x10] sm:$0xff]   ;;  %v3693_v8 = vld [vmem:[%s4614_s2 + $0x18] sm:$0xff]  }
 0x98d   : > { %v3504_v10 = vpop.f32.mrb[27].mxu1  ;;  %v2062_v11 = vsel %vm1326_vm2, %v2004_v9, -inf }
 0x98e   : > { %2063 = vmax.xlane.f32.xlu1 %v2062_v11  ;;  %v3695_v10 = vld [vmem:[%s4614_s2 + $0x28] sm:$0xff]   ;;  %v3696_v11 = vld [vmem:[%s4614_s2 + $0x30] sm:$0xff]  }
 0x995   : > { %v1948_v12 = vpop.f32.mrb[32].mxu0 }
 0x996   : > { %v3497_v13 = vpop.f32.mrb[33].mxu0 }
 0x997   : > { %v1951_v14 = vpop.f32.mrb[34].mxu0 }
 0x998   : > { %v1956_v15 = vpack.c.bf16 %v1951_v14, %v1948_v12  ;;  %v3498_v33 = vpop.f32.mrb[35].mxu0  ;;  %v3697_v12 = vld [vmem:[%s4614_s2 + $0x38] sm:$0xff]  }
 0x99d   : > { %v2052_v16 = vpop.f32.mrb[36].mxu0 }
 0x99e   : > { %v3509_v17 = vpop.f32.mrb[37].mxu0  ;;  %v2065_v19 = vsel %vm1326_vm2, %v2052_v16, -inf }
 0x99f   : > { %2066 = vmax.xlane.f32.xlu0 %v2065_v19  ;;  %v2055_v22 = vpop.f32.mrb[38].mxu0 }
 0x9a0   : > { %v3510_v23 = vpop.f32.mrb[39].mxu0  ;;  %v2068_v24 = vsel %vm1326_vm2, %v2055_v22, -inf }
 0x9a3   : > { %2069 = vmax.xlane.f32.xlu0 %v2068_v24 }
 0xa19   : > { %v2061_v25 = vpop.xlane.xlu0 %2060 }
 0xa1a   : > { %v2071_v26 = vsub.f32 %v2001_v5, %v2061_v25  ;;  %v3691_v5 = vld [vmem:[%s4614_s2 + $0x8] sm:$0xff]  }
 0xa1b   : > { %v2064_v50 = vpop.xlane.xlu1 %2063 }
 0xa1c   : > { %v2075_v27 = vmul.f32 1.442695, %v2071_v26  ;;  %v2072_v28 = vsub.f32 %v2004_v9, %v2064_v50  ;;  %v3694_v9 = vld [vmem:[%s4614_s2 + $0x20] sm:$0xff]  }
 0xa1e   : > { %3786 = vpow2.f32 %v2075_v27  ;;  %v2077_v30 = vmul.f32 1.442695, %v2072_v28 }
 0xa20   : > { %3788 = vpow2.f32 %v2077_v30 }
 0xa28   : > { %v3787_v34 = vpop.eup %3786 }
 0xa29   : > { %v2083_v37 = vsel %vm1326_vm2, %v3787_v34, 0.0 }
 0xa2a   : > { %v3789_v40 = vpop.eup %3788  ;;  %2084 = vadd.xlane.f32.xlu0 %v2083_v37 }
 0xa2b   : > { %v2086_v43 = vsel %vm1326_vm2, %v3789_v40, 0.0 }
 0xa2c   : > { %2087 = vadd.xlane.f32.xlu1 %v2086_v43  ;;  %v2067_v49 = vpop.xlane.xlu0 %2066 }
 0xa2d   : > { %v2073_v44 = vsub.f32 %v2052_v16, %v2067_v49 }
 0xa2f   : > { %v2079_v60 = vmul.f32 1.442695, %v2073_v44 }
 0xa30   : > { %v2070_v61 = vpop.xlane.xlu0 %2069 }
 0xa31   : > { %3790 = vpow2.f32 %v2079_v60  ;;  %v2074_v45 = vsub.f32 %v2055_v22, %v2070_v61 }
 0xa33   : > { %v2081_v46 = vmul.f32 1.442695, %v2074_v45 }
 0xa35   : > { %3792 = vpow2.f32 %v2081_v46 }
 0xa3b   : > { %v3791_v47 = vpop.eup %3790 }
 0xa3c   : > { %v2089_v51 = vsel %vm1326_vm2, %v3791_v47, 0.0 }
 0xa3d   : > { %2090 = vadd.xlane.f32.xlu0 %v2089_v51 }
 0xa3f   : > { %v3793_v52 = vpop.eup %3792 }
 0xa40   : > { %v2092_v55 = vsel %vm1326_vm2, %v3793_v52, 0.0 }
 0xa41   : > { %2093 = vadd.xlane.f32.xlu1 %v2092_v55  ;;  %v3820_v55 = vld [vmem:[#allocation2 + $0x10] sm:$0xff] }
 0xa52   : > { %2152 = vrot.lane.b32.xlu1 %v4720_v53, %s4142_s6 }
 0xa53   : > { %2105 = vrot.lane.b32.xlu0 %v4714_v48, %s4142_s6 }
 0xa56   : > { %2203 = vrot.lane.b32.xlu1 %v1711_v42, %s4142_s6 }
 0xa57   : > { %2209 = vrot.lane.b32.xlu0 %v1955_v3, %s4141_s16 }
 0xa5a   : > { %2205 = vrot.lane.b32.xlu1 %v1712_v57, %s4142_s6 }
 0xa5e   : > { %2211 = vrot.lane.b32.xlu1 %v1956_v15, %s4141_s16 }
 0xab7   : > { %v2085_v59 = vpop.xlane.xlu0 %2084 }
 0xab9   : > { %v2088_v58 = vpop.xlane.xlu1 %2087 }
 0xaba   : > { %3794 = vrcp.f32 %v2088_v58 }
 0xabb   : > { %3796 = vrcp.f32 %v2085_v59  ;;  %v3821_v59 = vld [vmem:[#allocation2 + $0x18] sm:$0xff] }
 0xac4   : > { %v3795_v53 = vpop.eup %3794 }
 0xac5   : > { %v3797_v62 = vpop.eup %3796  ;;  %v2098_v63 = vmul.f32 %v3795_v53, %v3789_v40 }
 0xac6   : > { %v2096_v39 = vmul.f32 %v3797_v62, %v3787_v34  ;;  %v3700_v62 = vld [vmem:[%s4616_s25 + $0x4] ss:$8 sps:$4 sm:$0xff]  }
 0xac8   : > { %v2103_v54 = vpack.c.bf16 %v2098_v63, %v2096_v39  ;;  %v3703_v63 = vld [vmem:[%s4616_s25 + $0x14] ss:$8 sps:$4 sm:$0xff]   ;;  %v3701_v39 = vld [vmem:[%s4616_s25 + $0x10] ss:$8 sps:$4 sm:$0xff]  }
 0xaca   : > { %v2091_v48 = vpop.xlane.xlu0 %2090 }
 0xacb   : > { %3798 = vrcp.f32 %v2091_v48  ;;  %v3698_v48 = vld [vmem:[%s4616_s25] ss:$8 sps:$4 sm:$0xff]  }
 0xace   : > { %v2094_v41 = vpop.xlane.xlu1 %2093  ;;  %v2106_v42 = vpop.permute.xlu0 %2105 }
 0xacf   : > { %3800 = vrcp.f32 %v2094_v41  ;;  %3512 = vmatpush3.bf16.msra.mxu1 %v2106_v42 }
 0xad0   : > { %3523 = vmatprep.subr.bf16.mxu1 %v3690_v4 }
 0xad2   : > { %v2153_v56 = vpop.permute.xlu1 %2152  ;;  %3514 = vmatmul.mubr.msk.bf16.vlgmr.msra.gmra.mrb[28].mxu1 %vm1326_vm2, %v2103_v54  ;;  %v2210_v26 = vpop.permute.xlu0 %2209 }
 0xad3   : > { %3518 = vmatpush3.bf16.msra.mxu0 %v2153_v56  ;;  %3524 = vmatpush3.bf16.msra.mxu1 %v3690_v4 }
 0xad4   : > { %3525 = vmatprep.subr.bf16.mxu1 %v3691_v5  ;;  %2538 = vmatprep.subr.bf16.mxu0 %v3700_v62 }
 0xad5   : > { %v3799_v57 = vpop.eup %3798 }
 0xad6   : > { %v2100_v1 = vmul.f32 %v3799_v57, %v3791_v47  ;;  %v2204_v25 = vpop.permute.xlu1 %2203  ;;  %v3819_v47 = vld [vmem:[#allocation2 + $0x8] sm:$0xff] }
 0xad7   : > { %3526 = vmatpush3.bf16.msra.mxu1 %v3691_v5  ;;  %v2221_v50 = vsel %vm1231_vm1, %v1461_v21, %v2204_v25  ;;  %v3719_v25 = vld [vmem:[%s4616_s25 + $0x70] ss:$8 sps:$4 sm:$0xff]  }
 0xad8   : > { %3527 = vmatprep.subr.bf16.mxu1 %v3692_v7  ;;  %v2227_v28 = vsel %vm2225_vm3, %v2221_v50, %v2210_v26  ;;  %v3722_v26 = vld [vmem:[%s4618_s12 + $0x40] sm:$0xff]  }
 0xad9   : > { %v3801_v0 = vpop.eup %3800  ;;  %v3723_v50 = vld [vmem:[%s4618_s12] sm:$0xff]  }
 0xada   : > { %v2102_v2 = vmul.f32 %v3801_v0, %v3793_v52  ;;  %v2206_v34 = vpop.permute.xlu1 %2205 }
 0xadb   : > { %3528 = vmatpush3.bf16.msra.mxu1 %v3692_v7  ;;  %v2224_v40 = vsel %vm1231_vm1, %v1462_v32, %v2206_v34  ;;  %v3727_v34 = vld [vmem:[%s4618_s12 + $0x10] sm:$0xff]  }
 0xadc   : > { %v2104_v3 = vpack.c.bf16 %v2102_v2, %v2100_v1  ;;  %3529 = vmatprep.subr.bf16.mxu1 %v3693_v8 }
 0xade   : > { %3520 = vmatmul.mubr.msk.bf16.vlgmr.msra.gmra.mrb[40].mxu0 %vm1326_vm2, %v2104_v3  ;;  %v2212_v37 = vpop.permute.xlu1 %2211 }
 0xadf   : > { %2570 = vmatprep.mubr.bf16.mxu0 %v4137_v6  ;;  %3530 = vmatpush3.bf16.msra.mxu1 %v3693_v8  ;;  %v2229_v43 = vsel %vm2225_vm3, %v2224_v40, %v2212_v37  ;;  %v3728_v37 = vld [vmem:[%s4618_s12 + $0x58] sm:$0xff]  }
 0xae0   : > { %3531 = vmatprep.subr.bf16.mxu1 %v3694_v9  ;;  %2539 = vmatpush1.bf16.msra.mxu0 %v3698_v48  ;;  %v3729_v40 = vld [vmem:[%s4618_s12 + $0x18] sm:$0xff]  }
 0xae1   : > { %2540 = vmatprep.subr.bf16.mxu0 %v3703_v63  ;;  %v3279_v63 = vld [vmem:[%s902_s22] ss:$0 sm:$0xff] }
 0xae3   : > { %3532 = vmatpush3.bf16.msra.mxu1 %v3694_v9 }
 0xae4   : > { %3533 = vmatprep.subr.bf16.mxu1 %v3695_v10  ;;  %2541 = vmatpush1.bf16.msra.mxu0 %v3701_v39 }
 0xae7   : > { %3534 = vmatpush3.bf16.msra.mxu1 %v3695_v10 }
 0xae8   : > { %3535 = vmatprep.subr.bf16.mxu1 %v3696_v11 }
 0xaeb   : > { %3536 = vmatpush3.bf16.msra.mxu1 %v3696_v11 }
 0xaec   : > { %3537 = vmatprep.subr.bf16.mxu1 %v3697_v12 }
 0xaef   : > { %3538 = vmatpush3.bf16.msra.mxu1 %v3697_v12  ;;  %v3706_v12 = vld [vmem:[%s4616_s25 + $0x24] ss:$8 sps:$4 sm:$0xff]  }
 0xaf0   : > { %2542 = vmatprep.subr.bf16.mxu0 %v3706_v12  ;;  %3379 = vmatprep.subr.bf16.mxu1 %v3722_v26  ;;  %v2446_v12 = vld [vmem:[%s4598_s21] sm:$0x3] }
 0xba5   : > { %v2145_v13 = vpop.f32.mrb[28].mxu1 }
 0xba6   : > { %v3515_v14 = vpop.f32.mrb[29].mxu1 }
 0xba7   : > { %v2148_v15 = vpop.f32.mrb[30].mxu1  ;;  %v3709_v14 = vld [vmem:[%s4616_s25 + $0x34] ss:$8 sps:$4 sm:$0xff]  }
 0xba8   : > { %v2199_v33 = vpack.c.bf16 %v2148_v15, %v2145_v13  ;;  %v3516_v16 = vpop.f32.mrb[31].mxu1  ;;  %v3704_v13 = vld [vmem:[%s4616_s25 + $0x20] ss:$8 sps:$4 sm:$0xff]   ;;  %v3707_v15 = vld [vmem:[%s4616_s25 + $0x30] ss:$8 sps:$4 sm:$0xff]  }
 0xba9   : > { %2543 = vmatpush1.bf16.msra.mxu0 %v3704_v13  ;;  %v3710_v16 = vld [vmem:[%s4616_s25 + $0x40] ss:$8 sps:$4 sm:$0xff]   ;;  %v2455_v13 = vrot.slane %v2446_v12, %v966_v38 }
 0xbaa   : > { %2215 = vrot.lane.b32.xlu0 %v2199_v33, %s4140_s4  ;;  %2544 = vmatprep.subr.bf16.mxu0 %v3709_v14  ;;  %v3712_v33 = vld [vmem:[%s4616_s25 + $0x44] ss:$8 sps:$4 sm:$0xff]  }
 0xbad   : > { %2545 = vmatpush1.bf16.msra.mxu0 %v3707_v15 }
 0xbae   : > { %2546 = vmatprep.subr.bf16.mxu0 %v3712_v33 }
 0xbb1   : > { %v2192_v17 = vpop.f32.mrb[40].mxu0  ;;  %2547 = vmatpush1.bf16.msra.mxu0 %v3710_v16 }
 0xbb2   : > { %v3521_v19 = vpop.f32.mrb[41].mxu0 }
 0xbb3   : > { %v2195_v22 = vpop.f32.mrb[42].mxu0  ;;  %v3713_v19 = vld [vmem:[%s4616_s25 + $0x50] ss:$8 sps:$4 sm:$0xff]  }
 0xbb4   : > { %v2200_v23 = vpack.c.bf16 %v2195_v22, %v2192_v17  ;;  %v3522_v24 = vpop.f32.mrb[43].mxu0  ;;  %v3715_v17 = vld [vmem:[%s4616_s25 + $0x54] ss:$8 sps:$4 sm:$0xff]   ;;  %v3718_v22 = vld [vmem:[%s4616_s25 + $0x64] ss:$8 sps:$4 sm:$0xff]  }
 0xbb5   : > { %2548 = vmatprep.subr.bf16.mxu0 %v3715_v17  ;;  %v3721_v24 = vld [vmem:[%s4616_s25 + $0x74] ss:$8 sps:$4 sm:$0xff]  }
 0xbb6   : > { %2217 = vrot.lane.b32.xlu1 %v2200_v23, %s4140_s4  ;;  %2549 = vmatpush1.bf16.msra.mxu0 %v3713_v19  ;;  %v3716_v23 = vld [vmem:[%s4616_s25 + $0x60] ss:$8 sps:$4 sm:$0xff]   ;;  %s5157_s4 = sld [smem:[#allocation39_spill]] (!%p3315_p11) }
 0xbb7   : > { %2550 = vmatprep.subr.bf16.mxu0 %v3718_v22 }
 0xbba   : > { %2551 = vmatpush1.bf16.msra.mxu0 %v3716_v23 }
 0xbbb   : > { %2552 = vmatprep.subr.bf16.mxu0 %v3721_v24 }
 0xbbe   : > { %2553 = vmatpush1.bf16.msra.mxu0 %v3719_v25 }
 0xc1c   : > { %v2216_v27 = vpop.permute.xlu0 %2215 }
 0xc1d   : > { %v2232_v30 = vsel %vm2230_vm4, %v2227_v28, %v2216_v27  ;;  %v3724_v27 = vld [vmem:[%s4618_s12 + $0x48] sm:$0xff]  }
 0xc1e   : > { %3539 = vmatprep.mubr.bf16.mxu1 %v2232_v30  ;;  %v3725_v28 = vld [vmem:[%s4618_s12 + $0x8] sm:$0xff]   ;;  %v3726_v30 = vld [vmem:[%s4618_s12 + $0x50] sm:$0xff]  }
 0xc28   : > { %v2218_v49 = vpop.permute.xlu1 %2217 }
 0xc29   : > { %v2235_v44 = vsel %vm2230_vm4, %v2229_v43, %v2218_v49  ;;  %v3730_v43 = vld [vmem:[%s4618_s12 + $0x60] sm:$0xff]  }
 0xc2a   : > { %3540 = vmatmul.mubr.bf16.vlgmr.msra.gmra.mrb[32].mxu1 %v2235_v44  ;;  %v3731_v49 = vld [vmem:[%s4618_s12 + $0x20] sm:$0xff]   ;;  %v3732_v44 = vld [vmem:[%s4618_s12 + $0x68] sm:$0xff]  }
 0xc2b   : > { %3380 = vmatpush3.bf16.msra.mxu1 %v3723_v50 }
 0xc2c   : > { %3381 = vmatprep.subr.bf16.mxu1 %v3724_v27 }
 0xc2f   : > { %3382 = vmatpush3.bf16.msra.mxu1 %v3725_v28 }
 0xc30   : > { %3383 = vmatprep.subr.bf16.mxu1 %v3726_v30 }
 0xc33   : > { %3384 = vmatpush3.bf16.msra.mxu1 %v3727_v34 }
 0xc34   : > { %3385 = vmatprep.subr.bf16.mxu1 %v3728_v37 }
 0xc37   : > { %3386 = vmatpush3.bf16.msra.mxu1 %v3729_v40 }
 0xc38   : > { %3387 = vmatprep.subr.bf16.mxu1 %v3730_v43 }
 0xc3b   : > { %3388 = vmatpush3.bf16.msra.mxu1 %v3731_v49 }
 0xc3c   : > { %3389 = vmatprep.subr.bf16.mxu1 %v3732_v44 }
 0xcfd   : > { %v3541_v20 = vpop.f32.mrb[32].mxu1 }
 0xcfe   : > { %v2342_v21 = vpop.f32.mrb[33].mxu1  ;;  %v2351_v46 = vadd.f32 %v3541_v20, %v3269_v18 }
 0xcff   : > { %v2343_v60 = vadd.f32 %v3269_v18, %v2342_v21  ;;  %v3542_v61 = vpop.f32.mrb[34].mxu1 }
 0xd00   : > { %v2345_v45 = vpop.f32.mrb[35].mxu1  ;;  %v2354_v52 = vadd.f32 %v3542_v61, %v3269_v18  ;;  %v2359_v58 = vadd.f32 %v3820_v55, %v2351_v46  ;;  %v3278_v55 = vld [vmem:[%s5151_s7] ss:$0 sm:$0xff] }
 0xd01   : > { %v2346_v29 = vadd.f32 %v3269_v18, %v2345_v45  ;;  %v2357_v32 = vadd.f32 %v3818_v31, %v2343_v60 }
 0xd02   : > { %v2360_v53 = vadd.f32 %v3821_v59, %v2354_v52 }
 0xd03   : > { %2363 = vadd.xlane.f32.xlu0 %v2357_v32  ;;  %v2358_v51 = vadd.f32 %v3819_v47, %v2346_v29 }
 0xd05   : > { %2365 = vadd.xlane.f32.xlu1 %v2358_v51 }
 0xd07   : > { %2367 = vadd.xlane.f32.xlu0 %v2359_v58 }
 0xd0b   : > { %2369 = vadd.xlane.f32.xlu0 %v2360_v53 }
 0xd90   : > { %v2364_v41 = vpop.xlane.xlu0 %2363 }
 0xd91   : > { %v2372_v42 = vmul.f32 0.0078125, %v2364_v41 }
 0xd92   : > { %v2366_v54 = vpop.xlane.xlu1 %2365 }
 0xd93   : > { %v4897_v56 = vsub.f32 %v2357_v32, %v2372_v42  ;;  %v2373_v57 = vmul.f32 0.0078125, %v2366_v54 }
 0xd94   : > { %v2368_v0 = vpop.xlane.xlu0 %2367 }
 0xd95   : > { %v4899_v1 = vsub.f32 %v2358_v51, %v2373_v57  ;;  %v2374_v2 = vmul.f32 0.0078125, %v2368_v0  ;;  %v2380_v3 = vmul.f32 %v4897_v56, %v4897_v56 }
 0xd97   : > { %v4903_v4 = vsub.f32 %v2359_v58, %v2374_v2  ;;  %2384 = vadd.xlane.f32.xlu0 %v2380_v3  ;;  %v2381_v5 = vmul.f32 %v4899_v1, %v4899_v1 }
 0xd98   : > { %v2370_v7 = vpop.xlane.xlu0 %2369 }
 0xd99   : > { %v2375_v8 = vmul.f32 0.0078125, %v2370_v7  ;;  %2386 = vadd.xlane.f32.xlu1 %v2381_v5  ;;  %v2382_v9 = vmul.f32 %v4903_v4, %v4903_v4  ;;  %v3733_v7 = vld [vmem:[%s4618_s12 + $0x28] sm:$0xff]  }
 0xd9a   : > { %3390 = vmatpush3.bf16.msra.mxu1 %v3733_v7 }
 0xd9b   : > { %v4909_v10 = vsub.f32 %v2360_v53, %v2375_v8  ;;  %2388 = vadd.xlane.f32.xlu0 %v2382_v9  ;;  %v3734_v8 = vld [vmem:[%s4618_s12 + $0x70] sm:$0xff]  }
 0xd9c   : > { %v3735_v9 = vld [vmem:[%s4618_s12 + $0x30] sm:$0xff]   ;;  %3391 = vmatprep.subr.bf16.mxu1 %v3734_v8 }
 0xd9d   : > { %v2383_v11 = vmul.f32 %v4909_v10, %v4909_v10 }
 0xd9e   : > { %3392 = vmatpush3.bf16.msra.mxu1 %v3735_v9 }
 0xd9f   : > { %2390 = vadd.xlane.f32.xlu1 %v2383_v11  ;;  %v3737_v11 = vld [vmem:[%s4618_s12 + $0x38] sm:$0xff]  }
 0xe24   : > { %v2385_v18 = vpop.xlane.xlu0 %2384 }
 0xe25   : > { %v2392_v20 = vmul.f32 0.0078125, %v2385_v18 }
 0xe26   : > { %v2387_v21 = vpop.xlane.xlu1 %2386 }
 0xe27   : > { %v2396_v60 = vadd.f32 1e-05, %v2392_v20  ;;  %v2393_v61 = vmul.f32 0.0078125, %v2387_v21 }
 0xe28   : > { %v2389_v45 = vpop.xlane.xlu0 %2388 }
 0xe29   : > { %3802 = vrsqrt.f32 %v2396_v60  ;;  %v2397_v46 = vadd.f32 1e-05, %v2393_v61  ;;  %v2394_v29 = vmul.f32 0.0078125, %v2389_v45  ;;  %v3296_v45 = vld [vmem:[%s909_s15] ss:$0 sm:$0xff] }
 0xe2b   : > { %3804 = vrsqrt.f32 %v2397_v46  ;;  %v2398_v31 = vadd.f32 1e-05, %v2394_v29 }
 0xe2c   : > { %v2391_v32 = vpop.xlane.xlu1 %2390 }
 0xe2d   : > { %3806 = vrsqrt.f32 %v2398_v31  ;;  %v2395_v47 = vmul.f32 0.0078125, %v2391_v32 }
 0xe2f   : > { %v2399_v51 = vadd.f32 1e-05, %v2395_v47 }
 0xe31   : > { %3808 = vrsqrt.f32 %v2399_v51 }
 0xe33   : > { %v3803_v52 = vpop.eup %3802 }
 0xe34   : > { %v2404_v58 = vmul.f32 %v3803_v52, %v4897_v56 }
 0xe35   : > { %v3805_v59 = vpop.eup %3804 }
 0xe36   : > { %v2405_v53 = vmul.f32 %v3805_v59, %v4899_v1  ;;  %v2414_v48 = vmul.f32 %v3278_v55, %v2404_v58 }
 0xe37   : > { %v3807_v62 = vpop.eup %3806 }
 0xe38   : > { %v2415_v39 = vmul.f32 %v3278_v55, %v2405_v53  ;;  %v4948_v41 = vadd.f32 %v3279_v63, %v2414_v48  ;;  %v2406_v54 = vmul.f32 %v3807_v62, %v4903_v4 }
 0xe3a   : > { %v4950_v42 = vadd.f32 %v3279_v63, %v2415_v39  ;;  %v2416_v1 = vmul.f32 %v3278_v55, %v2406_v54 }
 0xe3b   : > { %v3809_v56 = vpop.eup %3808 }
 0xe3c   : > { %v2428_v57 = vpack.c.bf16 %v4950_v42, %v4948_v41  ;;  %v2407_v0 = vmul.f32 %v3809_v56, %v4909_v10  ;;  %v4959_v5 = vadd.f32 %v3279_v63, %v2416_v1  ;;  %v3736_v10 = vld [vmem:[%s4618_s12 + $0x78] sm:$0xff]  }
 0xe3d   : > { %3393 = vmatprep.subr.bf16.mxu1 %v3736_v10 }
 0xe3e   : > { %2571 = vmatmul.mubr.bf16.vlgmr.msra.gmra.mrb[44].mxu0 %v2428_v57  ;;  %v2417_v2 = vmul.f32 %v3278_v55, %v2407_v0  ;;  %3394 = vmatpush3.bf16.msra.mxu1 %v3737_v11 }
 0xe3f   : > { %2580 = vmatprep.mubr.bf16.mxu0 %v4137_v6  ;;  %v2451_v6 = vrot.slane %v2446_v12, %v962_v36 }
 0xe40   : > { %v4957_v3 = vadd.f32 %v3279_v63, %v2417_v2 }
 0xe42   : > { %v2429_v4 = vpack.c.bf16 %v4957_v3, %v4959_v5 }
 0xe46   : > { %2581 = vmatmul.mubr.bf16.gmra.mrb[48].mxu0 %v2429_v4 }
 0xf11   : > { %v2572_v14 = vpop.f32.mrb[44].mxu0 }
 0xf12   : > { %v2573_v15 = vadd.f32 %v2572_v14, %v2451_v6  ;;  %v2574_v33 = vpop.f32.mrb[45].mxu0 }
 0xf13   : > { %v2575_v16 = vadd.f32 %v2574_v33, %v2455_v13  ;;  %v2576_v17 = vpop.f32.mrb[46].mxu0 }
 0xf14   : > { %v2577_v19 = vadd.f32 %v2576_v17, %v2451_v6  ;;  %v2578_v22 = vpop.f32.mrb[47].mxu0  ;;  %v2591_v24 = vmax.f32 %v2573_v15, 0.0 }
 0xf15   : > { %v2579_v23 = vadd.f32 %v2578_v22, %v2455_v13  ;;  %v2592_v26 = vmax.f32 %v2575_v16, 0.0 }
 0xf16   : > { %v2593_v25 = vmax.f32 %v2577_v19, 0.0 }
 0xf17   : > { %v2594_v50 = vmax.f32 %v2579_v23, 0.0 }
 0xf18   : > { %v2599_v27 = vpack.c.bf16 %v2593_v25, %v2591_v24 }
 0xf19   : > { %v2600_v28 = vpack.c.bf16 %v2594_v50, %v2592_v26  ;;  %v2582_v30 = vpop.f32.mrb[48].mxu0 }
 0xf1a   : > { %v2583_v34 = vadd.f32 %v2582_v30, %v2451_v6  ;;  %v2584_v36 = vpop.f32.mrb[49].mxu0  ;;  %v3313_v30 = vld [vmem:[%s912_s17] ss:$0 sm:$0xff]  ;;  %s5156_s17 = sld [smem:[#allocation38_spill]] (!%p3315_p11) }
 0xf1b   : > { %v2585_v37 = vadd.f32 %v2584_v36, %v2455_v13  ;;  %v2586_v35 = vpop.f32.mrb[50].mxu0  ;;  %2770 = vmatprep.mubr.bf16.mxu1 %v2600_v28 }
 0xf1c   : > { %v2587_v38 = vadd.f32 %v2586_v35, %v2451_v6  ;;  %v2588_v40 = vpop.f32.mrb[51].mxu0  ;;  %2771 = vmatmul.mubr.bf16.vlgmr.msra.gmra.mrb[36].mxu1 %v2599_v27  ;;  %v2595_v49 = vmax.f32 %v2583_v34, 0.0 }
 0xf1d   : > { %v2589_v43 = vadd.f32 %v2588_v40, %v2455_v13  ;;  %v2596_v18 = vmax.f32 %v2585_v37, 0.0  ;;  %v3314_v37 = vld [vmem:[%s915_s23] ss:$0 sm:$0xff] }
 0xf1e   : > { %v2597_v44 = vmax.f32 %v2587_v38, 0.0 }
 0xf1f   : > { %v2598_v20 = vmax.f32 %v2589_v43, 0.0 }
 0xf20   : > { %v2601_v21 = vpack.c.bf16 %v2597_v44, %v2595_v49 }
 0xf21   : > { %v2602_v60 = vpack.c.bf16 %v2598_v20, %v2596_v18 }
 0xf23   : > { %2778 = vmatprep.mubr.bf16.mxu1 %v2602_v60 }
 0xf24   : > { %2779 = vmatmul.mubr.bf16.gmra.mrb[40].mxu1 %v2601_v21 }
 0xfef   : > { %v3395_v61 = vpop.f32.mrb[36].mxu1 }
 0xff0   : > { %v3396_v46 = vpop.f32.mrb[37].mxu1 }
 0xff1   : > { %v3397_v29 = vadd.f32 %v3396_v46, %v3395_v61  ;;  %v3398_v31 = vpop.f32.mrb[38].mxu1 }
 0xff2   : > { %v3399_v32 = vpop.f32.mrb[39].mxu1 }
 0xff3   : > { %v2773_v47 = vadd.f32 %v3397_v29, %v3296_v45  ;;  %v3400_v51 = vadd.f32 %v3399_v32, %v3398_v31 }
 0xff5   : > { %v2776_v52 = vadd.f32 %v3400_v51, %v3296_v45  ;;  %v2787_v55 = vadd.f32 %v2773_v47, %v4948_v41 }
 0xff7   : > { %v3401_v58 = vpop.f32.mrb[40].mxu1  ;;  %2793 = vadd.xlane.f32.xlu0 %v2787_v55  ;;  %v2788_v59 = vadd.f32 %v2776_v52, %v4950_v42 }
 0xff8   : > { %v3402_v53 = vpop.f32.mrb[41].mxu1 }
 0xff9   : > { %v3403_v48 = vadd.f32 %v3402_v53, %v3401_v58  ;;  %v3404_v62 = vpop.f32.mrb[42].mxu1  ;;  %2795 = vadd.xlane.f32.xlu1 %v2788_v59 }
 0xffa   : > { %v3405_v63 = vpop.f32.mrb[43].mxu1 }
 0xffb   : > { %v2781_v39 = vadd.f32 %v3403_v48, %v3296_v45  ;;  %v3406_v54 = vadd.f32 %v3405_v63, %v3404_v62 }
 0xffd   : > { %v2784_v56 = vadd.f32 %v3406_v54, %v3296_v45  ;;  %v2789_v57 = vadd.f32 %v2781_v39, %v4959_v5 }
 0xfff   : > { %2797 = vadd.xlane.f32.xlu0 %v2789_v57  ;;  %v2790_v0 = vadd.f32 %v2784_v56, %v4957_v3 }
0x1001   : > { %2799 = vadd.xlane.f32.xlu1 %v2790_v0 }
0x1084   : > { %v2794_v1 = vpop.xlane.xlu0 %2793 }
0x1085   : > { %v2801_v41 = vmul.f32 0.0078125, %v2794_v1 }
0x1086   : > { %v2796_v2 = vpop.xlane.xlu1 %2795 }
0x1087   : > { %v2805_v4 = vsub.f32 %v2787_v55, %v2801_v41  ;;  %v2802_v7 = vmul.f32 0.0078125, %v2796_v2 }
0x1089   : > { %v2806_v42 = vsub.f32 %v2788_v59, %v2802_v7  ;;  %v2809_v8 = vmul.f32 %v2805_v4, %v2805_v4 }
0x108b   : > { %2813 = vadd.xlane.f32.xlu0 %v2809_v8  ;;  %v2810_v9 = vmul.f32 %v2806_v42, %v2806_v42 }
0x108c   : > { %v2798_v10 = vpop.xlane.xlu0 %2797 }
0x108d   : > { %v2803_v11 = vmul.f32 0.0078125, %v2798_v10  ;;  %2815 = vadd.xlane.f32.xlu1 %v2810_v9 }
0x108e   : > { %v2800_v12 = vpop.xlane.xlu1 %2799 }
0x108f   : > { %v2807_v6 = vsub.f32 %v2789_v57, %v2803_v11  ;;  %v2804_v13 = vmul.f32 0.0078125, %v2800_v12 }
0x1091   : > { %v2808_v5 = vsub.f32 %v2790_v0, %v2804_v13  ;;  %v2811_v14 = vmul.f32 %v2807_v6, %v2807_v6 }
0x1093   : > { %2817 = vadd.xlane.f32.xlu0 %v2811_v14  ;;  %v2812_v3 = vmul.f32 %v2808_v5, %v2808_v5 }
0x1095   : > { %2819 = vadd.xlane.f32.xlu1 %v2812_v3 }
0x1118   : > { %v2814_v15 = vpop.xlane.xlu0 %2813 }
0x1119   : > { %v2821_v33 = vmul.f32 0.0078125, %v2814_v15 }
0x111a   : > { %v2816_v16 = vpop.xlane.xlu1 %2815 }
0x111b   : > { %v2825_v17 = vadd.f32 1e-05, %v2821_v33  ;;  %v2822_v19 = vmul.f32 0.0078125, %v2816_v16 }
0x111d   : > { %3810 = vrsqrt.f32 %v2825_v17  ;;  %v2826_v22 = vadd.f32 1e-05, %v2822_v19 }
0x111f   : > { %3812 = vrsqrt.f32 %v2826_v22 }
0x1120   : > { %v2818_v23 = vpop.xlane.xlu0 %2817 }
0x1121   : > { %v2823_v24 = vmul.f32 0.0078125, %v2818_v23 }
0x1122   : > { %v2820_v25 = vpop.xlane.xlu1 %2819 }
0x1123   : > { %v2827_v26 = vadd.f32 1e-05, %v2823_v24  ;;  %v2824_v50 = vmul.f32 0.0078125, %v2820_v25 }
0x1125   : > { %3814 = vrsqrt.f32 %v2827_v26  ;;  %v2828_v27 = vadd.f32 1e-05, %v2824_v50 }
0x1127   : > { %v3811_v28 = vpop.eup %3810  ;;  %3816 = vrsqrt.f32 %v2828_v27 }
0x1128   : > { %v2833_v34 = vmul.f32 %v3811_v28, %v2805_v4 }
0x1129   : > { %v3813_v36 = vpop.eup %3812 }
0x112a   : > { %v2843_v35 = vmul.f32 %v3313_v30, %v2833_v34  ;;  %v2834_v38 = vmul.f32 %v3813_v36, %v2806_v42 }
0x112c   : > { %v2853_v40 = vadd.f32 %v3314_v37, %v2843_v35  ;;  %v2844_v43 = vmul.f32 %v3313_v30, %v2834_v38 }
0x112e   : > { %2857 = vst [vmem:[#allocation2] sm:$0xff] %v2853_v40  ;;  %v2854_v49 = vadd.f32 %v3314_v37, %v2844_v43  ;;  %2867 = vadd.xlane.f32.xlu0 (!%p3315_p11), %v2853_v40 }
0x112f   : > { %v3815_v44 = vpop.eup %3814 }
0x1130   : > { %2858 = vst [vmem:[#allocation2 + $0x8] sm:$0xff] %v2854_v49  ;;  %v2835_v18 = vmul.f32 %v3815_v44, %v2807_v6  ;;  %v3316_v6 = vld [vmem:[%s5156_s17] ss:$0 sm:$0xff] (!%p3315_p11) }
0x1131   : > { %v3817_v20 = vpop.eup %3816 }
0x1132   : > { %v2845_v21 = vmul.f32 %v3313_v30, %v2835_v18  ;;  %v2836_v60 = vmul.f32 %v3817_v20, %v2808_v5  ;;  %2864 = sbr.rel (%p3315_p11) target bundleno = 4722 (0x1272), region = 128  ;;  %2869 = vadd.xlane.f32.xlu0 (!%p3315_p11), %v2854_v49  ;;  %v3317_v5 = vld [vmem:[%s5157_s4] ss:$0 sm:$0xff] (!%p3315_p11) }
0x1134   : > { %v2855_v61 = vadd.f32 %v3314_v37, %v2845_v21  ;;  %v2846_v45 = vmul.f32 %v3313_v30, %v2836_v60 }
0x1136   : > { %2859 = vst [vmem:[#allocation2 + $0x10] sm:$0xff] %v2855_v61  ;;  %v2856_v46 = vadd.f32 %v3314_v37, %v2846_v45  ;;  %2871 = vadd.xlane.f32.xlu1 (!%p3315_p11), %v2855_v61 }
0x1138   : > { %2860 = vst [vmem:[#allocation2 + $0x18] sm:$0xff] %v2856_v46 }
0x113a   : > { %2873 = vadd.xlane.f32.xlu1 %v2856_v46 }
0x11bb   : > { %v2868_v29 = vpop.xlane.xlu0 %2867 }
0x11bc   : > { %v2875_v32 = vmul.f32 0.0078125, %v2868_v29 }
0x11be   : > { %v2879_v51 = vsub.f32 %v2853_v40, %v2875_v32 }
0x11bf   : > { %v2870_v55 = vpop.xlane.xlu0 %2869 }
0x11c0   : > { %v2876_v59 = vmul.f32 0.0078125, %v2870_v55  ;;  %v2883_v53 = vmul.f32 %v2879_v51, %v2879_v51 }
0x11c2   : > { %v2880_v62 = vsub.f32 %v2854_v49, %v2876_v59  ;;  %2887 = vadd.xlane.f32.xlu0 %v2883_v53 }
0x11c3   : > { %v2872_v31 = vpop.xlane.xlu1 %2871 }
0x11c4   : > { %v2877_v47 = vmul.f32 0.0078125, %v2872_v31  ;;  %v2884_v54 = vmul.f32 %v2880_v62, %v2880_v62 }
0x11c6   : > { %v2881_v52 = vsub.f32 %v2855_v61, %v2877_v47  ;;  %2889 = vadd.xlane.f32.xlu1 %v2884_v54 }
0x11c7   : > { %v2874_v58 = vpop.xlane.xlu1 %2873 }
0x11c8   : > { %v2878_v48 = vmul.f32 0.0078125, %v2874_v58  ;;  %v2885_v39 = vmul.f32 %v2881_v52, %v2881_v52 }
0x11ca   : > { %v2882_v63 = vsub.f32 %v2856_v46, %v2878_v48  ;;  %2891 = vadd.xlane.f32.xlu0 %v2885_v39 }
0x11cc   : > { %v2886_v56 = vmul.f32 %v2882_v63, %v2882_v63 }
0x11ce   : > { %2893 = vadd.xlane.f32.xlu1 %v2886_v56 }
0x124f   : > { %v2888_v57 = vpop.xlane.xlu0 %2887 }
0x1250   : > { %v2895_v0 = vmul.f32 0.0078125, %v2888_v57 }
0x1252   : > { %v2899_v1 = vadd.f32 1e-05, %v2895_v0 }
0x1253   : > { %v2890_v41 = vpop.xlane.xlu1 %2889 }
0x1254   : > { %3822 = vrsqrt.f32 %v2899_v1  ;;  %v2896_v4 = vmul.f32 0.0078125, %v2890_v41 }
0x1256   : > { %v2900_v42 = vadd.f32 1e-05, %v2896_v4 }
0x1257   : > { %v2892_v2 = vpop.xlane.xlu0 %2891 }
0x1258   : > { %v2897_v7 = vmul.f32 0.0078125, %v2892_v2  ;;  %3824 = vrsqrt.f32 %v2900_v42 }
0x125a   : > { %v2901_v8 = vadd.f32 1e-05, %v2897_v7 }
0x125b   : > { %v2894_v9 = vpop.xlane.xlu1 %2893 }
0x125c   : > { %v2898_v10 = vmul.f32 0.0078125, %v2894_v9  ;;  %3826 = vrsqrt.f32 %v2901_v8 }
0x125e   : > { %v2902_v11 = vadd.f32 1e-05, %v2898_v10  ;;  %v3823_v12 = vpop.eup %3822 }
0x125f   : > { %v2907_v13 = vmul.f32 %v3823_v12, %v2879_v51 }
0x1260   : > { %3828 = vrsqrt.f32 %v2902_v11 }
0x1261   : > { %v2917_v14 = vmul.f32 %v3316_v6, %v2907_v13 }
0x1262   : > { %v3825_v3 = vpop.eup %3824 }
0x1263   : > { %v2927_v33 = vadd.f32 %v3317_v5, %v2917_v14  ;;  %v2908_v16 = vmul.f32 %v3825_v3, %v2880_v62 }
0x1265   : > { %2931 = vst [vmem:[#allocation13] sm:$0xff] %v2927_v33  ;;  %v2918_v19 = vmul.f32 %v3316_v6, %v2908_v16 }
0x1266   : > { %v3827_v15 = vpop.eup %3826 }
0x1267   : > { %v2909_v17 = vmul.f32 %v3827_v15, %v2881_v52  ;;  %v2928_v24 = vadd.f32 %v3317_v5, %v2918_v19 }
0x1269   : > { %v2919_v23 = vmul.f32 %v3316_v6, %v2909_v17  ;;  %2932 = vst [vmem:[#allocation13 + $0x8] sm:$0xff] %v2928_v24 }
0x126a   : > { %v3829_v22 = vpop.eup %3828 }
0x126b   : > { %v2910_v25 = vmul.f32 %v3829_v22, %v2882_v63  ;;  %v2929_v26 = vadd.f32 %v3317_v5, %v2919_v23 }
0x126d   : > { %v2920_v50 = vmul.f32 %v3316_v6, %v2910_v25  ;;  %2933 = vst [vmem:[#allocation13 + $0x10] sm:$0xff] %v2929_v26 }
0x126f   : > { %v2930_v27 = vadd.f32 %v3317_v5, %v2920_v50 }
0x1271   : > { %2934 = vst [vmem:[#allocation13 + $0x18] sm:$0xff] %v2930_v27 }
0x1272 PF: > { %p3593_p4 = scmp.eq.s32.totalorder %s4270_s1, 1  ;;  %s4143_s16 = smov [#allocation13]  }
0x1273   : > { %s2945_s6 = sshll.u32 %s4143_s16, 4  ;;  %s2946_s6 = int_to_ptr.vmem [resolvable:$true] %s2945_s6 }
0x1274   : > { %s4036_s24 = scalar_lea.vmem %s2946_s6, 512  ;;  %p4043_p9 = scmp.lt.s32.totalorder %s2946_s6, %s2946_s6 }
0x1275   : > { %p4037_p12 = scmp.ne.s32.totalorder %s2946_s6, %s4036_s24  ;;  %p4044_p13 = scmp.lt.s32.totalorder %s4036_s24, %s4036_s24 }
0x1277   : > { %p4038_p7 = pnand %p4037_p12, %p3593_p4  ;;  %p4045_p10 = por %p4044_p13, %p4043_p9 }
0x1279   : > { %p4039_p2 = pneg %p4038_p7 }
0x127b   : > { %p4046_p6 = pnand %p4045_p10, %p4039_p2 }
0x127d   : > { %4049 = shalt.err (!%p4046_p6)
}
0x127e   : > { %s5158_s18 = sld [smem:[#allocation40_spill]] }
0x1284   : > { %s4050_s10 = scalar_lea.hbm %s5158_s18, 512 }
0x1285   : > { %p4051_p0 = scmp.ne.s32.totalorder %s5158_s18, %s4050_s10  ;;  %p4056_p1 = scmp.lt.u32.totalorder %s4050_s10, %s5158_s18 }
0x1287   : > { %p4052_p8 = pnand %p4051_p0, %p3593_p4 }
0x1289   : > { %p4053_p3 = pneg %p4052_p8 }
0x128b   : > { %p4058_p5 = pnand %p4056_p1, %p4053_p3 }
0x128d   : > { %4061 = shalt.err (!%p4058_p5)
}
0x128e   : > { %s4144_s20 = smov 128   ;;  %s4145_s27 = smov 8  }
0x128f   : > { %3562 = dma.vmem_to_hbm [thread:$0]  (%p3593_p4), %s2946_s6, 512, %s5158_s18, [#allocation5], %s4144_s20, %s4144_s20, %s4145_s27  }
0x1290   : > { %4099 = dma.done.wait (%p3593_p4), [#allocation5], 512  }
0x1291   : > { %4101 = vsyncadd (%p3593_p4), [#allocation5], 4294966784 }
0x1292 PF: > { %s5159_s26 = sld [smem:[#allocation20_spill]]  ;;  %s5160_s15 = sld [smem:[#allocation18_spill]] }
0x1293   : > { %s5161_s29 = sld [smem:[#allocation22_spill]]  ;;  %s5162_s30 = sld [smem:[#allocation19_spill]] }
0x1294   : > { %s5163_s0 = sld [smem:[#allocation21_spill]]  ;;  %s5164_s27 = smov %s4108_s28 }
0x1298   : > { %s31_s19 = sadd.s32 1, %s5159_s26   ;;  %s5165_s28 = smov %s5160_s15 }
0x1299   : > { %p28_p11 = scmp.ge.s32.totalorder %s31_s19, 4  }
0x129b   :  { %30 = sbr.rel (!%p28_p11) target bundleno = 24 (0x18), region = 217 }
0x12a2   :  { %2961 = vsyncpa [#allocation4], 1 }
0x12a3   :  { %2963 = vsyncpa [#allocation4 + $0x1], 1 }
0x12a4   :  { %2964 = vsyncpa [#allocation7], 1 }
0x12a5   :  { %2965 = vsyncpa [#allocation5], 1 }
0x12a6   :  { %2967 = vsyncpa [#allocation5 + $0x1], 1 }

</bundles_post_ra>
